<compile_context>
chip_gen: v7x
topology: tpu7x:2x2x1
jax: 0.10.0
libtpu: 0.0.40
codegen_flags: <defaults>
</compile_context>

<pallas_src>
import jax
import jax.numpy as jnp
from jax.experimental import pallas as pl
from jax.experimental.pallas import tpu as pltpu

EPS = 1e-5


def _bn_relu(acc, sel, sel_t, gamma, beta, inv_cnt):
    """Training-mode BatchNorm + ReLU on a lane-dense (R, L=W*Cout) slab.

    sel:   (L, C) 0/1 selector with sel[x*C + co, c] = (co == c)
    sel_t: (C, L) its transpose
    gamma, beta: (1, C)
    """
    colsum = jnp.sum(acc, axis=0, keepdims=True)                               # (1, L)
    mean_c = jnp.dot(colsum, sel, preferred_element_type=jnp.float32) * inv_cnt  # (1, C)
    mean_l = jnp.dot(mean_c, sel_t, preferred_element_type=jnp.float32)          # (1, L)
    d = acc - mean_l
    sqsum = jnp.sum(d * d, axis=0, keepdims=True)                              # (1, L)
    var_c = jnp.dot(sqsum, sel, preferred_element_type=jnp.float32) * inv_cnt  # (1, C)
    scale_c = gamma * jax.lax.rsqrt(var_c + EPS)                               # (1, C)
    shift_c = beta - mean_c * scale_c                                          # (1, C)
    scale_l = jnp.dot(scale_c, sel_t, preferred_element_type=jnp.float32)      # (1, L)
    shift_l = jnp.dot(shift_c, sel_t, preferred_element_type=jnp.float32)      # (1, L)
    return jnp.maximum(acc * scale_l + shift_l, 0.0)                           # 1 FMA + max


def fused_conv_block_kernel(x_ref, b1_ref, b2_ref, sel_ref, selt_ref,
                            g1_ref, be1_ref, g2_ref, be2_ref,
                            o_ref, pad1_ref, pad2_ref):
    # x_ref:    (N, H, k1)        lane-padded NHWC input slab (k1 mult. of 128)
    # b1_ref:   (3*k1, L)         banded stage-1 conv weight
    # b2_ref:   (3*k2, L)         banded stage-2 conv weight
    # sel_ref:  (L, C), selt_ref: (C, L)   per-channel 0/1 selector
    # g*/be*:   (1, C)            BN gamma / beta per stage
    # o_ref:    (N, H, L)         lane-dense output slab, L = W*Cout
    # pad1_ref: (N, H+2, k1), pad2_ref: (N, H+2, k2)   H-halo scratch
    N, H, k1 = x_ref.shape
    L = o_ref.shape[-1]
    C = sel_ref.shape[-1]
    W = L // C
    k2 = pad2_ref.shape[-1]
    inv_cnt = 1.0 / float(N * H * W)

    sel = sel_ref[...]
    sel_t = selt_ref[...]

    # ------------------- stage 1: Conv3x3 -> BN -> ReLU ---------------------
    pad1_ref[...] = jnp.zeros_like(pad1_ref)          # zero H-halo rows
    pad1_ref[:, 1:H + 1, :] = x_ref[...]
    lhs1 = jnp.concatenate(                           # (N, H, 3*k1), 128-aligned
        [pad1_ref[:, 0:H, :], pad1_ref[:, 1:H + 1, :], pad1_ref[:, 2:H + 2, :]],
        axis=-1).reshape(N * H, 3 * k1)
    acc1 = jnp.dot(lhs1, b1_ref[...], preferred_element_type=jnp.float32)   # (N*H, L)
    y1 = _bn_relu(acc1, sel, sel_t, g1_ref[...], be1_ref[...], inv_cnt)

    # ------------------- stage 2: Conv3x3 -> BN -> ReLU ---------------------
    pad2_ref[...] = jnp.zeros_like(pad2_ref)
    pad2_ref[:, 1:H + 1, 0:L] = y1.reshape(N, H, L)
    lhs2 = jnp.concatenate(
        [pad2_ref[:, 0:H, :], pad2_ref[:, 1:H + 1, :], pad2_ref[:, 2:H + 2, :]],
        axis=-1).reshape(N * H, 3 * k2)
    acc2 = jnp.dot(lhs2, b2_ref[...], preferred_element_type=jnp.float32)   # (N*H, L)
    y2 = _bn_relu(acc2, sel, sel_t, g2_ref[...], be2_ref[...], inv_cnt)

    o_ref[...] = y2.reshape(N, H, L).astype(o_ref.dtype)


def _round_up(n, m):
    return ((n + m - 1) // m) * m


def _banded_conv_weight(w_hwio, W, k_pad):
    """Fold a (3,3,Ci,Co) conv weight into a banded matmul weight.

    Returns B of shape (3*k_pad, W*Co) such that, for H-padded NHWC row slabs
    row(y)[x*Ci + ci] = x[y, x, ci],
        concat([row(y-1), row(y), row(y+1)]) @ B
    equals the 3x3 SAME-padded conv output row flattened as x_out*Co + co.
    The W zero-padding is absorbed into the band structure; rows >= W*Ci of
    each k_pad block are zero (lane padding of the slab).
    """
    kh, kw, ci, co = w_hwio.shape
    xi = jnp.arange(W)
    dx = xi[:, None] - xi[None, :] + (kw // 2)                     # (W_in, W_out)
    valid = ((dx >= 0) & (dx < kw)).astype(w_hwio.dtype)
    taps = w_hwio[:, jnp.clip(dx, 0, kw - 1)]                      # (kh, Wi, Wo, ci, co)
    taps = taps * valid[None, :, :, None, None]
    blocks = jnp.transpose(taps, (0, 1, 3, 2, 4)).reshape(kh, W * ci, W * co)
    blocks = jnp.pad(blocks, ((0, 0), (0, k_pad - W * ci), (0, 0)))
    return blocks.reshape(kh * k_pad, W * co)


@jax.jit
def conv_block_forward(x_nchw, params):
    """Conv_Block.forward: two Conv3x3+BN+ReLU stages. NCHW in, NCHW out."""
    w1, g1, b1, w2, g2, b2 = params
    N, Cin, H, W = x_nchw.shape
    Cout = w1.shape[-1]
    L = W * Cout
    k1 = _round_up(W * Cin, 128)
    k2 = _round_up(L, 128)

    # NCHW -> lane-dense, lane-padded NHWC slab (N, H, k1).  Tiny; fused by XLA.
    x_slab = jnp.transpose(x_nchw, (0, 2, 3, 1)).reshape(N, H, W * Cin)
    x_slab = jnp.pad(x_slab, ((0, 0), (0, 0), (0, k1 - W * Cin)))

    B1 = _banded_conv_weight(w1, W, k1)                           # (3*k1, L)
    B2 = _banded_conv_weight(w2, W, k2)                           # (3*k2, L)
    sel = jnp.tile(jnp.eye(Cout, dtype=jnp.float32), (W, 1))      # (L, Cout)
    sel_t = sel.T                                                 # (Cout, L)

    out_slab = pl.pallas_call(
        fused_conv_block_kernel,
        out_shape=jax.ShapeDtypeStruct((N, H, L), jnp.float32),
        in_specs=[pl.BlockSpec(memory_space=pltpu.MemorySpace.VMEM)] * 9,
        out_specs=pl.BlockSpec(memory_space=pltpu.MemorySpace.VMEM),
        scratch_shapes=[
            pltpu.VMEM((N, H + 2, k1), jnp.float32),   # H-halo stage-1 input
            pltpu.VMEM((N, H + 2, k2), jnp.float32),   # H-halo stage-2 input
        ],
    )(x_slab, B1, B2, sel, sel_t,
      g1.reshape(1, -1), b1.reshape(1, -1), g2.reshape(1, -1), b2.reshape(1, -1))

    return jnp.transpose(out_slab.reshape(N, H, W, Cout), (0, 3, 1, 2))


# ---------------- reference (plain JAX) for a sanity check ------------------
def ref_stage(x_nhwc, w_hwio, gamma, beta):
    y = jax.lax.conv_general_dilated(
        x_nhwc, w_hwio, window_strides=(1, 1), padding="SAME",
        dimension_numbers=("NHWC", "HWIO", "NHWC"))
    mean = y.mean(axis=(0, 1, 2))
    var = ((y - mean) ** 2).mean(axis=(0, 1, 2))
    y = (y - mean) * jax.lax.rsqrt(var + EPS) * gamma + beta
    return jnp.maximum(y, 0.0)


def ref_forward(x_nchw, params):
    w1, g1, b1, w2, g2, b2 = params
    x = jnp.transpose(x_nchw, (0, 2, 3, 1))
    y = ref_stage(x, w1, g1, b1)
    y = ref_stage(y, w2, g2, b2)
    return jnp.transpose(y, (0, 3, 1, 2))


if __name__ == "__main__":
    N, Cin, Cout, H, W = 2, 4, 8, 16, 16

    key = jax.random.PRNGKey(0)
    kx, kw1, kw2, kg1, kb1, kg2, kb2 = jax.random.split(key, 7)

    x = jax.random.normal(kx, (N, Cin, H, W), jnp.float32)        # NCHW, like torch

    # Deterministic synthetic parameters (HWIO conv weights, BN affine params).
    w1 = jax.random.normal(kw1, (3, 3, Cin, Cout), jnp.float32) * 0.1
    w2 = jax.random.normal(kw2, (3, 3, Cout, Cout), jnp.float32) * 0.1
    g1 = 1.0 + 0.1 * jax.random.normal(kg1, (Cout,), jnp.float32)
    b1 = 0.1 * jax.random.normal(kb1, (Cout,), jnp.float32)
    g2 = 1.0 + 0.1 * jax.random.normal(kg2, (Cout,), jnp.float32)
    b2 = 0.1 * jax.random.normal(kb2, (Cout,), jnp.float32)
    params = (w1, g1, b1, w2, g2, b2)

    out = jax.block_until_ready(conv_block_forward(x, params))
    ref = jax.block_until_ready(ref_forward(x, params))

    assert out.shape == (N, Cout, H, W), out.shape
    assert jnp.allclose(out, ref, rtol=2e-4, atol=2e-4), float(
        jnp.max(jnp.abs(out - ref)))

    print("KERNEL_OK")
</pallas_src>

<mosaic_0001>
module attributes {stable_mosaic.version = 11 : i64} {
  func.func @fused_conv_block_kernel(%arg0: memref<2x16x128xf32, #tpu.memory_space<vmem>>, %arg1: memref<384x128xf32, #tpu.memory_space<vmem>>, %arg2: memref<384x128xf32, #tpu.memory_space<vmem>>, %arg3: memref<128x8xf32, #tpu.memory_space<vmem>>, %arg4: memref<8x128xf32, #tpu.memory_space<vmem>>, %arg5: memref<1x8xf32, #tpu.memory_space<vmem>>, %arg6: memref<1x8xf32, #tpu.memory_space<vmem>>, %arg7: memref<1x8xf32, #tpu.memory_space<vmem>>, %arg8: memref<1x8xf32, #tpu.memory_space<vmem>>, %arg9: memref<2x16x128xf32, #tpu.memory_space<vmem>>, %arg10: memref<2x18x128xf32, #tpu.memory_space<vmem>>, %arg11: memref<2x18x128xf32, #tpu.memory_space<vmem>>) attributes {dimension_semantics = [], scalar_prefetch = 0 : i64, scratch_operands = 2 : i64, tpu.core_type = #tpu.core_type<tc>} {
    %c0 = arith.constant 0 : index
    %c0_0 = arith.constant 0 : index
    %0 = vector.load %arg3[%c0, %c0_0] : memref<128x8xf32, #tpu.memory_space<vmem>>, vector<128x8xf32>
    %c0_1 = arith.constant 0 : index
    %c0_2 = arith.constant 0 : index
    %1 = vector.load %arg4[%c0_1, %c0_2] : memref<8x128xf32, #tpu.memory_space<vmem>>, vector<8x128xf32>
    %cst = arith.constant 0.000000e+00 : f32
    %2 = vector.broadcast %cst : f32 to vector<2x18x128xf32>
    %c0_3 = arith.constant 0 : index
    %c0_4 = arith.constant 0 : index
    %c0_5 = arith.constant 0 : index
    %3 = vector.load %arg10[%c0_3, %c0_4, %c0_5] : memref<2x18x128xf32, #tpu.memory_space<vmem>>, vector<2x18x128xf32>
    tpu.vector_store %arg10[%c0_3, %c0_4, %c0_5], %2 {strides = array<i32>} : memref<2x18x128xf32, #tpu.memory_space<vmem>>, vector<2x18x128xf32>,
    %c0_6 = arith.constant 0 : index
    %c0_7 = arith.constant 0 : index
    %c0_8 = arith.constant 0 : index
    %4 = vector.load %arg0[%c0_6, %c0_7, %c0_8] : memref<2x16x128xf32, #tpu.memory_space<vmem>>, vector<2x16x128xf32>
    %c0_9 = arith.constant 0 : index
    %c1 = arith.constant 1 : index
    %c0_10 = arith.constant 0 : index
    %5 = vector.load %arg10[%c0_9, %c1, %c0_10] : memref<2x18x128xf32, #tpu.memory_space<vmem>>, vector<2x16x128xf32>
    tpu.vector_store %arg10[%c0_9, %c1, %c0_10], %4 {strides = array<i32>} : memref<2x18x128xf32, #tpu.memory_space<vmem>>, vector<2x16x128xf32>,
    %c0_11 = arith.constant 0 : index
    %c0_12 = arith.constant 0 : index
    %c0_13 = arith.constant 0 : index
    %6 = vector.load %arg10[%c0_11, %c0_12, %c0_13] : memref<2x18x128xf32, #tpu.memory_space<vmem>>, vector<2x16x128xf32>
    %c0_14 = arith.constant 0 : index
    %c1_15 = arith.constant 1 : index
    %c0_16 = arith.constant 0 : index
    %7 = vector.load %arg10[%c0_14, %c1_15, %c0_16] : memref<2x18x128xf32, #tpu.memory_space<vmem>>, vector<2x16x128xf32>
    %c0_17 = arith.constant 0 : index
    %c2 = arith.constant 2 : index
    %c0_18 = arith.constant 0 : index
    %8 = vector.load %arg10[%c0_17, %c2, %c0_18] : memref<2x18x128xf32, #tpu.memory_space<vmem>>, vector<2x16x128xf32>
    %9 = tpu.concatenate %6, %7, %8 in 2 : vector<2x16x128xf32>, vector<2x16x128xf32>, vector<2x16x128xf32> -> vector<2x16x384xf32>
    %10 = vector.shape_cast %9 : vector<2x16x384xf32> to vector<32x384xf32>
    %c0_19 = arith.constant 0 : index
    %c0_20 = arith.constant 0 : index
    %11 = vector.load %arg1[%c0_19, %c0_20] : memref<384x128xf32, #tpu.memory_space<vmem>>, vector<384x128xf32>
    %cst_21 = arith.constant dense<0.000000e+00> : vector<32x128xf32>
    %12 = tpu.matmul %10, %11, %cst_21 {dimension_numbers = #tpu.dot_dimension_numbers<[1], [0], [0], [1], [0, 0, 1, 1], [], []>} : vector<32x384xf32>, vector<384x128xf32>, vector<32x128xf32> -> vector<32x128xf32>
    %c0_22 = arith.constant 0 : index
    %c0_23 = arith.constant 0 : index
    %13 = vector.load %arg5[%c0_22, %c0_23] : memref<1x8xf32, #tpu.memory_space<vmem>>, vector<1x8xf32>
    %c0_24 = arith.constant 0 : index
    %c0_25 = arith.constant 0 : index
    %14 = vector.load %arg6[%c0_24, %c0_25] : memref<1x8xf32, #tpu.memory_space<vmem>>, vector<1x8xf32>
    %cst_26 = arith.constant dense<0.000000e+00> : vector<128xf32>
    %15 = vector.multi_reduction <add>, %12, %cst_26 [0] : vector<32x128xf32> to vector<128xf32>
    %16 = vector.shape_cast %15 : vector<128xf32> to vector<1x128xf32>
    %cst_27 = arith.constant dense<0.000000e+00> : vector<1x8xf32>
    %17 = tpu.matmul %16, %0, %cst_27 {dimension_numbers = #tpu.dot_dimension_numbers<[1], [0], [0], [1], [0, 0, 1, 1], [], []>} : vector<1x128xf32>, vector<128x8xf32>, vector<1x8xf32> -> vector<1x8xf32>
    %cst_28 = arith.constant 0.001953125 : f32
    %18 = vector.broadcast %cst_28 : f32 to vector<1x8xf32>
    %19 = arith.mulf %17, %18 : vector<1x8xf32>
    %cst_29 = arith.constant dense<0.000000e+00> : vector<1x128xf32>
    %20 = tpu.matmul %19, %1, %cst_29 {dimension_numbers = #tpu.dot_dimension_numbers<[1], [0], [0], [1], [0, 0, 1, 1], [], []>} : vector<1x8xf32>, vector<8x128xf32>, vector<1x128xf32> -> vector<1x128xf32>
    %21 = vector.broadcast %20 : vector<1x128xf32> to vector<32x128xf32>
    %22 = arith.subf %12, %21 : vector<32x128xf32>
    %23 = arith.mulf %22, %22 : vector<32x128xf32>
    %cst_30 = arith.constant dense<0.000000e+00> : vector<128xf32>
    %24 = vector.multi_reduction <add>, %23, %cst_30 [0] : vector<32x128xf32> to vector<128xf32>
    %25 = vector.shape_cast %24 : vector<128xf32> to vector<1x128xf32>
    %cst_31 = arith.constant dense<0.000000e+00> : vector<1x8xf32>
    %26 = tpu.matmul %25, %0, %cst_31 {dimension_numbers = #tpu.dot_dimension_numbers<[1], [0], [0], [1], [0, 0, 1, 1], [], []>} : vector<1x128xf32>, vector<128x8xf32>, vector<1x8xf32> -> vector<1x8xf32>
    %cst_32 = arith.constant 0.001953125 : f32
    %27 = vector.broadcast %cst_32 : f32 to vector<1x8xf32>
    %28 = arith.mulf %26, %27 : vector<1x8xf32>
    %cst_33 = arith.constant 9.99999974E-6 : f32
    %29 = vector.broadcast %cst_33 : f32 to vector<1x8xf32>
    %30 = arith.addf %28, %29 : vector<1x8xf32>
    %31 = math.rsqrt %30 : vector<1x8xf32>
    %32 = arith.mulf %13, %31 : vector<1x8xf32>
    %33 = arith.mulf %19, %32 : vector<1x8xf32>
    %34 = arith.subf %14, %33 : vector<1x8xf32>
    %cst_34 = arith.constant dense<0.000000e+00> : vector<1x128xf32>
    %35 = tpu.matmul %32, %1, %cst_34 {dimension_numbers = #tpu.dot_dimension_numbers<[1], [0], [0], [1], [0, 0, 1, 1], [], []>} : vector<1x8xf32>, vector<8x128xf32>, vector<1x128xf32> -> vector<1x128xf32>
    %cst_35 = arith.constant dense<0.000000e+00> : vector<1x128xf32>
    %36 = tpu.matmul %34, %1, %cst_35 {dimension_numbers = #tpu.dot_dimension_numbers<[1], [0], [0], [1], [0, 0, 1, 1], [], []>} : vector<1x8xf32>, vector<8x128xf32>, vector<1x128xf32> -> vector<1x128xf32>
    %37 = vector.broadcast %35 : vector<1x128xf32> to vector<32x128xf32>
    %38 = arith.mulf %12, %37 : vector<32x128xf32>
    %39 = vector.broadcast %36 : vector<1x128xf32> to vector<32x128xf32>
    %40 = arith.addf %38, %39 : vector<32x128xf32>
    %cst_36 = arith.constant 0.000000e+00 : f32
    %41 = vector.broadcast %cst_36 : f32 to vector<32x128xf32>
    %42 = arith.maximumf %40, %41 : vector<32x128xf32>
    %cst_37 = arith.constant 0.000000e+00 : f32
    %43 = vector.broadcast %cst_37 : f32 to vector<2x18x128xf32>
    %c0_38 = arith.constant 0 : index
    %c0_39 = arith.constant 0 : index
    %c0_40 = arith.constant 0 : index
    %44 = vector.load %arg11[%c0_38, %c0_39, %c0_40] : memref<2x18x128xf32, #tpu.memory_space<vmem>>, vector<2x18x128xf32>
    tpu.vector_store %arg11[%c0_38, %c0_39, %c0_40], %43 {strides = array<i32>} : memref<2x18x128xf32, #tpu.memory_space<vmem>>, vector<2x18x128xf32>,
    %45 = vector.shape_cast %42 : vector<32x128xf32> to vector<2x16x128xf32>
    %c0_41 = arith.constant 0 : index
    %c1_42 = arith.constant 1 : index
    %c0_43 = arith.constant 0 : index
    %46 = vector.load %arg11[%c0_41, %c1_42, %c0_43] : memref<2x18x128xf32, #tpu.memory_space<vmem>>, vector<2x16x128xf32>
    tpu.vector_store %arg11[%c0_41, %c1_42, %c0_43], %45 {strides = array<i32>} : memref<2x18x128xf32, #tpu.memory_space<vmem>>, vector<2x16x128xf32>,
    %c0_44 = arith.constant 0 : index
    %c0_45 = arith.constant 0 : index
    %c0_46 = arith.constant 0 : index
    %47 = vector.load %arg11[%c0_44, %c0_45, %c0_46] : memref<2x18x128xf32, #tpu.memory_space<vmem>>, vector<2x16x128xf32>
    %c0_47 = arith.constant 0 : index
    %c1_48 = arith.constant 1 : index
    %c0_49 = arith.constant 0 : index
    %48 = vector.load %arg11[%c0_47, %c1_48, %c0_49] : memref<2x18x128xf32, #tpu.memory_space<vmem>>, vector<2x16x128xf32>
    %c0_50 = arith.constant 0 : index
    %c2_51 = arith.constant 2 : index
    %c0_52 = arith.constant 0 : index
    %49 = vector.load %arg11[%c0_50, %c2_51, %c0_52] : memref<2x18x128xf32, #tpu.memory_space<vmem>>, vector<2x16x128xf32>
    %50 = tpu.concatenate %47, %48, %49 in 2 : vector<2x16x128xf32>, vector<2x16x128xf32>, vector<2x16x128xf32> -> vector<2x16x384xf32>
    %51 = vector.shape_cast %50 : vector<2x16x384xf32> to vector<32x384xf32>
    %c0_53 = arith.constant 0 : index
    %c0_54 = arith.constant 0 : index
    %52 = vector.load %arg2[%c0_53, %c0_54] : memref<384x128xf32, #tpu.memory_space<vmem>>, vector<384x128xf32>
    %cst_55 = arith.constant dense<0.000000e+00> : vector<32x128xf32>
    %53 = tpu.matmul %51, %52, %cst_55 {dimension_numbers = #tpu.dot_dimension_numbers<[1], [0], [0], [1], [0, 0, 1, 1], [], []>} : vector<32x384xf32>, vector<384x128xf32>, vector<32x128xf32> -> vector<32x128xf32>
    %c0_56 = arith.constant 0 : index
    %c0_57 = arith.constant 0 : index
    %54 = vector.load %arg7[%c0_56, %c0_57] : memref<1x8xf32, #tpu.memory_space<vmem>>, vector<1x8xf32>
    %c0_58 = arith.constant 0 : index
    %c0_59 = arith.constant 0 : index
    %55 = vector.load %arg8[%c0_58, %c0_59] : memref<1x8xf32, #tpu.memory_space<vmem>>, vector<1x8xf32>
    %cst_60 = arith.constant dense<0.000000e+00> : vector<128xf32>
    %56 = vector.multi_reduction <add>, %53, %cst_60 [0] : vector<32x128xf32> to vector<128xf32>
    %57 = vector.shape_cast %56 : vector<128xf32> to vector<1x128xf32>
    %cst_61 = arith.constant dense<0.000000e+00> : vector<1x8xf32>
    %58 = tpu.matmul %57, %0, %cst_61 {dimension_numbers = #tpu.dot_dimension_numbers<[1], [0], [0], [1], [0, 0, 1, 1], [], []>} : vector<1x128xf32>, vector<128x8xf32>, vector<1x8xf32> -> vector<1x8xf32>
    %cst_62 = arith.constant 0.001953125 : f32
    %59 = vector.broadcast %cst_62 : f32 to vector<1x8xf32>
    %60 = arith.mulf %58, %59 : vector<1x8xf32>
    %cst_63 = arith.constant dense<0.000000e+00> : vector<1x128xf32>
    %61 = tpu.matmul %60, %1, %cst_63 {dimension_numbers = #tpu.dot_dimension_numbers<[1], [0], [0], [1], [0, 0, 1, 1], [], []>} : vector<1x8xf32>, vector<8x128xf32>, vector<1x128xf32> -> vector<1x128xf32>
    %62 = vector.broadcast %61 : vector<1x128xf32> to vector<32x128xf32>
    %63 = arith.subf %53, %62 : vector<32x128xf32>
    %64 = arith.mulf %63, %63 : vector<32x128xf32>
    %cst_64 = arith.constant dense<0.000000e+00> : vector<128xf32>
    %65 = vector.multi_reduction <add>, %64, %cst_64 [0] : vector<32x128xf32> to vector<128xf32>
    %66 = vector.shape_cast %65 : vector<128xf32> to vector<1x128xf32>
    %cst_65 = arith.constant dense<0.000000e+00> : vector<1x8xf32>
    %67 = tpu.matmul %66, %0, %cst_65 {dimension_numbers = #tpu.dot_dimension_numbers<[1], [0], [0], [1], [0, 0, 1, 1], [], []>} : vector<1x128xf32>, vector<128x8xf32>, vector<1x8xf32> -> vector<1x8xf32>
    %cst_66 = arith.constant 0.001953125 : f32
    %68 = vector.broadcast %cst_66 : f32 to vector<1x8xf32>
    %69 = arith.mulf %67, %68 : vector<1x8xf32>
    %cst_67 = arith.constant 9.99999974E-6 : f32
    %70 = vector.broadcast %cst_67 : f32 to vector<1x8xf32>
    %71 = arith.addf %69, %70 : vector<1x8xf32>
    %72 = math.rsqrt %71 : vector<1x8xf32>
    %73 = arith.mulf %54, %72 : vector<1x8xf32>
    %74 = arith.mulf %60, %73 : vector<1x8xf32>
    %75 = arith.subf %55, %74 : vector<1x8xf32>
    %cst_68 = arith.constant dense<0.000000e+00> : vector<1x128xf32>
    %76 = tpu.matmul %73, %1, %cst_68 {dimension_numbers = #tpu.dot_dimension_numbers<[1], [0], [0], [1], [0, 0, 1, 1], [], []>} : vector<1x8xf32>, vector<8x128xf32>, vector<1x128xf32> -> vector<1x128xf32>
    %cst_69 = arith.constant dense<0.000000e+00> : vector<1x128xf32>
    %77 = tpu.matmul %75, %1, %cst_69 {dimension_numbers = #tpu.dot_dimension_numbers<[1], [0], [0], [1], [0, 0, 1, 1], [], []>} : vector<1x8xf32>, vector<8x128xf32>, vector<1x128xf32> -> vector<1x128xf32>
    %78 = vector.broadcast %76 : vector<1x128xf32> to vector<32x128xf32>
    %79 = arith.mulf %53, %78 : vector<32x128xf32>
    %80 = vector.broadcast %77 : vector<1x128xf32> to vector<32x128xf32>
    %81 = arith.addf %79, %80 : vector<32x128xf32>
    %cst_70 = arith.constant 0.000000e+00 : f32
    %82 = vector.broadcast %cst_70 : f32 to vector<32x128xf32>
    %83 = arith.maximumf %81, %82 : vector<32x128xf32>
    %84 = vector.shape_cast %83 : vector<32x128xf32> to vector<2x16x128xf32>
    %c0_71 = arith.constant 0 : index
    %c0_72 = arith.constant 0 : index
    %c0_73 = arith.constant 0 : index
    %85 = vector.load %arg9[%c0_71, %c0_72, %c0_73] : memref<2x16x128xf32, #tpu.memory_space<vmem>>, vector<2x16x128xf32>
    tpu.vector_store %arg9[%c0_71, %c0_72, %c0_73], %84 {strides = array<i32>} : memref<2x16x128xf32, #tpu.memory_space<vmem>>, vector<2x16x128xf32>,
    return
  }
}

</mosaic_0001>

<bundles_post_ra>
// kernel: tile.9
= control target key start
LH: loop header
LB: loop body
LE: loop exit
PB: predicated region body
PF: predicated region fallthrough
CT: control target
= control target key end

     0   :  { %vm6_vm0 = vcmask 1043458   ;;  %vm10_vm1 = vcmask 1045508   ;;  %vm14_vm2 = vcmask 1047558   ;;  %s19_s6 = smov 3  ;;  %s22_s7 = smov 12  ;;  %vm16_vm3 = vcmask 64512   ;;  %s736_s0 = inlined_call_operand.vmem [shape: f32[16,8,8], index: 0, kind: input, shape index: {}]   ;;  %s737_s1 = inlined_call_operand.vmem [shape: f32[128,8], index: 1, kind: output, shape index: {}]  }
   0x1   :  { %v348_v0 = vld [vmem:[%s736_s0 + $0xf] ss:$16 sm:%s19_s6]   ;;  %s27_s12 = smov 48  ;;  %s32_s13 = smov 192  ;;  %vm38_vm4 = vcmask 1048512   ;;  %vm60_vm5 = vcmask 982912  }
   0x2   :  { %v349_v1 = vld [vmem:[%s736_s0 + $0xf] ss:$16 sm:%s22_s7]   ;;  %s63_s18 = smov 3  ;;  %s66_s21 = smov 12  ;;  %vm82_vm6 = vcmask 917312   ;;  %vm104_vm7 = vcmask 851712  }
   0x3   :  { %v25_v2 = vsel %vm6_vm0, %v349_v1, %v348_v0  ;;  %v350_v3 = vld [vmem:[%s736_s0 + $0xf] ss:$16 sm:%s27_s12]   ;;  %v356_v6 = vld [vmem:[%s736_s0 + $0xd] ss:$16 sm:%s63_s18]   ;;  %s71_s22 = smov 48  ;;  %s76_s27 = smov 192 }
   0x4   :  { %v351_v4 = vld [vmem:[%s736_s0 + $0xf] ss:$16 sm:%s32_s13]   ;;  %v30_v5 = vsel %vm10_vm1, %v350_v3, %v25_v2  ;;  %v357_v8 = vld [vmem:[%s736_s0 + $0xd] ss:$16 sm:%s66_s21]   ;;  %s423_s28 = smov 120   ;;  %s41_s2 = smov 3 }
   0x5   :  { %v35_v7 = vsel %vm14_vm2, %v351_v4, %v30_v5  ;;  %v358_v9 = vld [vmem:[%s736_s0 + $0xd] ss:$16 sm:%s71_s22]   ;;  %v69_v10 = vsel %vm6_vm0, %v357_v8, %v356_v6  ;;  %s44_s3 = smov 12  ;;  %v352_v13 = vld [vmem:[%s736_s0 + $0xe] ss:$16 sm:%s41_s2]   ;;  %s49_s8 = smov 48 }
   0x6   :  { %36 = vrot.lane.b32.xlu0 %v35_v7, %s423_s28  ;;  %v359_v11 = vld [vmem:[%s736_s0 + $0xd] ss:$16 sm:%s76_s27]   ;;  %v74_v12 = vsel %vm10_vm1, %v358_v9, %v69_v10  ;;  %s54_s9 = smov 192  ;;  %s85_s14 = smov 3  ;;  %vm126_vm8 = vcmask 786112   ;;  %vm148_vm9 = vcmask 720512  }
   0x7   :  { %v353_v14 = vld [vmem:[%s736_s0 + $0xe] ss:$16 sm:%s44_s3]   ;;  %v79_v15 = vsel %vm14_vm2, %v359_v11, %v74_v12  ;;  %s424_s15 = smov 104   ;;  %v360_v20 = vld [vmem:[%s736_s0 + $0xc] ss:$16 sm:%s85_s14]   ;;  %s88_s18 = smov 12 }
   0x8   :  { %v47_v16 = vsel %vm6_vm0, %v353_v14, %v352_v13  ;;  %v354_v17 = vld [vmem:[%s736_s0 + $0xe] ss:$16 sm:%s49_s8]   ;;  %80 = vrot.lane.b32.xlu1 %v79_v15, %s424_s15  ;;  %s93_s19 = smov 48  ;;  %s98_s24 = smov 192  ;;  %vm170_vm10 = vcmask 654912   ;;  %vm192_vm11 = vcmask 589312  }
   0x9   :  { %v355_v18 = vld [vmem:[%s736_s0 + $0xe] ss:$16 sm:%s54_s9]   ;;  %v52_v19 = vsel %vm10_vm1, %v354_v17, %v47_v16  ;;  %v361_v22 = vld [vmem:[%s736_s0 + $0xc] ss:$16 sm:%s88_s18]   ;;  %s425_s25 = smov 112   ;;  %s107_s28 = smov 3 }
   0xa   :  { %v57_v21 = vsel %vm14_vm2, %v355_v18, %v52_v19  ;;  %v362_v23 = vld [vmem:[%s736_s0 + $0xc] ss:$16 sm:%s93_s19]   ;;  %v91_v24 = vsel %vm6_vm0, %v361_v22, %v360_v20  ;;  %s110_s29 = smov 12  ;;  %v364_v27 = vld [vmem:[%s736_s0 + $0xb] ss:$16 sm:%s107_s28]   ;;  %s115_s5 = smov 48 }
   0xb   :  { %58 = vrot.lane.b32.xlu0 %v57_v21, %s425_s25  ;;  %v363_v25 = vld [vmem:[%s736_s0 + $0xc] ss:$16 sm:%s98_s24]   ;;  %v96_v26 = vsel %vm10_vm1, %v362_v23, %v91_v24  ;;  %s120_s6 = smov 192  ;;  %s129_s11 = smov 3  ;;  %vm214_vm12 = vcmask 523712   ;;  %vm236_vm13 = vcmask 458112  }
   0xc   :  { %v365_v28 = vld [vmem:[%s736_s0 + $0xb] ss:$16 sm:%s110_s29]   ;;  %v101_v29 = vsel %vm14_vm2, %v363_v25, %v96_v26  ;;  %s426_s12 = smov 96   ;;  %v368_v34 = vld [vmem:[%s736_s0 + $0xa] ss:$16 sm:%s129_s11]   ;;  %s132_s15 = smov 12 }
   0xd   :  { %v113_v30 = vsel %vm6_vm0, %v365_v28, %v364_v27  ;;  %v366_v31 = vld [vmem:[%s736_s0 + $0xb] ss:$16 sm:%s115_s5]   ;;  %102 = vrot.lane.b32.xlu1 %v101_v29, %s426_s12  ;;  %s137_s16 = smov 48  ;;  %s142_s21 = smov 192  ;;  %vm258_vm14 = vcmask 392512   ;;  %vm280_vm15 = vcmask 326912  }
   0xe   :  { %v367_v32 = vld [vmem:[%s736_s0 + $0xb] ss:$16 sm:%s120_s6]   ;;  %v118_v33 = vsel %vm10_vm1, %v366_v31, %v113_v30  ;;  %v369_v36 = vld [vmem:[%s736_s0 + $0xa] ss:$16 sm:%s132_s15]   ;;  %s427_s22 = smov 88   ;;  %s151_s25 = smov 3 }
   0xf   :  { %v123_v35 = vsel %vm14_vm2, %v367_v32, %v118_v33  ;;  %v370_v37 = vld [vmem:[%s736_s0 + $0xa] ss:$16 sm:%s137_s16]   ;;  %v135_v38 = vsel %vm6_vm0, %v369_v36, %v368_v34  ;;  %s154_s26 = smov 12  ;;  %v372_v41 = vld [vmem:[%s736_s0 + $0x9] ss:$16 sm:%s151_s25]   ;;  %s159_s2 = smov 48 }
  0x10   :  { %124 = vrot.lane.b32.xlu0 %v123_v35, %s427_s22  ;;  %v371_v39 = vld [vmem:[%s736_s0 + $0xa] ss:$16 sm:%s142_s21]   ;;  %v140_v40 = vsel %vm10_vm1, %v370_v37, %v135_v38  ;;  %s164_s3 = smov 192  ;;  %s173_s8 = smov 3 }
  0x11   :  { %v373_v42 = vld [vmem:[%s736_s0 + $0x9] ss:$16 sm:%s154_s26]   ;;  %v145_v43 = vsel %vm14_vm2, %v371_v39, %v140_v40  ;;  %s428_s9 = smov 80   ;;  %v376_v48 = vld [vmem:[%s736_s0 + $0x8] ss:$16 sm:%s173_s8]   ;;  %s176_s12 = smov 12 }
  0x12   :  { %v157_v44 = vsel %vm6_vm0, %v373_v42, %v372_v41  ;;  %v374_v45 = vld [vmem:[%s736_s0 + $0x9] ss:$16 sm:%s159_s2]   ;;  %146 = vrot.lane.b32.xlu1 %v145_v43, %s428_s9  ;;  %s181_s13 = smov 48  ;;  %s186_s18 = smov 192 }
  0x13   :  { %v375_v46 = vld [vmem:[%s736_s0 + $0x9] ss:$16 sm:%s164_s3]   ;;  %v162_v47 = vsel %vm10_vm1, %v374_v45, %v157_v44  ;;  %v377_v50 = vld [vmem:[%s736_s0 + $0x8] ss:$16 sm:%s176_s12]   ;;  %s429_s19 = smov 72   ;;  %s195_s22 = smov 3 }
  0x14   :  { %v167_v49 = vsel %vm14_vm2, %v375_v46, %v162_v47  ;;  %v378_v51 = vld [vmem:[%s736_s0 + $0x8] ss:$16 sm:%s181_s13]   ;;  %v179_v52 = vsel %vm6_vm0, %v377_v50, %v376_v48  ;;  %s198_s23 = smov 12  ;;  %v380_v55 = vld [vmem:[%s736_s0 + $0x7] ss:$16 sm:%s195_s22]   ;;  %s203_s28 = smov 48 }
  0x15   :  { %168 = vrot.lane.b32.xlu0 %v167_v49, %s429_s19  ;;  %v379_v53 = vld [vmem:[%s736_s0 + $0x8] ss:$16 sm:%s186_s18]   ;;  %v184_v54 = vsel %vm10_vm1, %v378_v51, %v179_v52  ;;  %s208_s29 = smov 192  ;;  %s217_s5 = smov 3 }
  0x16   :  { %v381_v56 = vld [vmem:[%s736_s0 + $0x7] ss:$16 sm:%s198_s23]   ;;  %v189_v57 = vsel %vm14_vm2, %v379_v53, %v184_v54  ;;  %s430_s6 = smov 64   ;;  %v384_v62 = vld [vmem:[%s736_s0 + $0x6] ss:$16 sm:%s217_s5]   ;;  %s220_s9 = smov 12 }
  0x17   :  { %v201_v58 = vsel %vm6_vm0, %v381_v56, %v380_v55  ;;  %v382_v59 = vld [vmem:[%s736_s0 + $0x7] ss:$16 sm:%s203_s28]   ;;  %190 = vrot.lane.b32.xlu1 %v189_v57, %s430_s6  ;;  %s225_s10 = smov 48  ;;  %s230_s15 = smov 192 }
  0x18   :  { %v383_v60 = vld [vmem:[%s736_s0 + $0x7] ss:$16 sm:%s208_s29]   ;;  %v206_v61 = vsel %vm10_vm1, %v382_v59, %v201_v58  ;;  %v385_v0 = vld [vmem:[%s736_s0 + $0x6] ss:$16 sm:%s220_s9]   ;;  %s431_s16 = smov 56   ;;  %s239_s19 = smov 3 }
  0x19   :  { %v211_v63 = vsel %vm14_vm2, %v383_v60, %v206_v61  ;;  %v386_v1 = vld [vmem:[%s736_s0 + $0x6] ss:$16 sm:%s225_s10]   ;;  %v223_v2 = vsel %vm6_vm0, %v385_v0, %v384_v62  ;;  %s242_s20 = smov 12  ;;  %v388_v5 = vld [vmem:[%s736_s0 + $0x5] ss:$16 sm:%s239_s19]   ;;  %s247_s25 = smov 48 }
  0x1a   :  { %212 = vrot.lane.b32.xlu0 %v211_v63, %s431_s16  ;;  %v387_v3 = vld [vmem:[%s736_s0 + $0x6] ss:$16 sm:%s230_s15]   ;;  %v228_v4 = vsel %vm10_vm1, %v386_v1, %v223_v2  ;;  %s252_s26 = smov 192  ;;  %s261_s2 = smov 3 }
  0x1b   :  { %v389_v6 = vld [vmem:[%s736_s0 + $0x5] ss:$16 sm:%s242_s20]   ;;  %v233_v7 = vsel %vm14_vm2, %v387_v3, %v228_v4  ;;  %s432_s3 = smov 48   ;;  %v392_v12 = vld [vmem:[%s736_s0 + $0x4] ss:$16 sm:%s261_s2]   ;;  %s264_s6 = smov 12 }
  0x1c   :  { %v245_v8 = vsel %vm6_vm0, %v389_v6, %v388_v5  ;;  %v390_v9 = vld [vmem:[%s736_s0 + $0x5] ss:$16 sm:%s247_s25]   ;;  %234 = vrot.lane.b32.xlu1 %v233_v7, %s432_s3  ;;  %s269_s7 = smov 48  ;;  %s274_s12 = smov 192 }
  0x1d   :  { %v391_v10 = vld [vmem:[%s736_s0 + $0x5] ss:$16 sm:%s252_s26]   ;;  %v250_v11 = vsel %vm10_vm1, %v390_v9, %v245_v8  ;;  %v393_v14 = vld [vmem:[%s736_s0 + $0x4] ss:$16 sm:%s264_s6]   ;;  %s433_s13 = smov 40   ;;  %s283_s16 = smov 3 }
  0x1e   :  { %v255_v13 = vsel %vm14_vm2, %v391_v10, %v250_v11  ;;  %v394_v15 = vld [vmem:[%s736_s0 + $0x4] ss:$16 sm:%s269_s7]   ;;  %v267_v16 = vsel %vm6_vm0, %v393_v14, %v392_v12  ;;  %s286_s17 = smov 12  ;;  %v396_v19 = vld [vmem:[%s736_s0 + $0x3] ss:$16 sm:%s283_s16]   ;;  %s291_s22 = smov 48 }
  0x1f   :  { %256 = vrot.lane.b32.xlu0 %v255_v13, %s433_s13  ;;  %v395_v17 = vld [vmem:[%s736_s0 + $0x4] ss:$16 sm:%s274_s12]   ;;  %v272_v18 = vsel %vm10_vm1, %v394_v15, %v267_v16  ;;  %s296_s23 = smov 192  ;;  %s305_s28 = smov 3 }
  0x20   :  { %v397_v20 = vld [vmem:[%s736_s0 + $0x3] ss:$16 sm:%s286_s17]   ;;  %v277_v21 = vsel %vm14_vm2, %v395_v17, %v272_v18  ;;  %s434_s29 = smov 32   ;;  %v400_v26 = vld [vmem:[%s736_s0 + $0x2] ss:$16 sm:%s305_s28]   ;;  %s308_s3 = smov 12 }
  0x21   :  { %v289_v22 = vsel %vm6_vm0, %v397_v20, %v396_v19  ;;  %v398_v23 = vld [vmem:[%s736_s0 + $0x3] ss:$16 sm:%s291_s22]   ;;  %278 = vrot.lane.b32.xlu1 %v277_v21, %s434_s29  ;;  %s313_s4 = smov 48  ;;  %s318_s9 = smov 192 }
  0x22   :  { %v399_v24 = vld [vmem:[%s736_s0 + $0x3] ss:$16 sm:%s296_s23]   ;;  %v294_v25 = vsel %vm10_vm1, %v398_v23, %v289_v22  ;;  %v401_v28 = vld [vmem:[%s736_s0 + $0x2] ss:$16 sm:%s308_s3]   ;;  %s435_s10 = smov 24   ;;  %s327_s13 = smov 3 }
  0x23   :  { %v299_v27 = vsel %vm14_vm2, %v399_v24, %v294_v25  ;;  %v402_v29 = vld [vmem:[%s736_s0 + $0x2] ss:$16 sm:%s313_s4]   ;;  %v311_v30 = vsel %vm6_vm0, %v401_v28, %v400_v26  ;;  %s330_s14 = smov 12  ;;  %v404_v33 = vld [vmem:[%s736_s0 + $0x1] ss:$16 sm:%s327_s13]   ;;  %s335_s19 = smov 48 }
  0x24   :  { %300 = vrot.lane.b32.xlu0 %v299_v27, %s435_s10  ;;  %v403_v31 = vld [vmem:[%s736_s0 + $0x2] ss:$16 sm:%s318_s9]   ;;  %v316_v32 = vsel %vm10_vm1, %v402_v29, %v311_v30  ;;  %s340_s20 = smov 192  ;;  %s2_s25 = smov 3 }
  0x25   :  { %v405_v34 = vld [vmem:[%s736_s0 + $0x1] ss:$16 sm:%s330_s14]   ;;  %v321_v35 = vsel %vm14_vm2, %v403_v31, %v316_v32  ;;  %s436_s26 = smov 16   ;;  %s4_s27 = smov 12  ;;  %v3_v40 = vld [vmem:[%s736_s0] ss:$16 sm:%s2_s25]  }
  0x26   :  { %v333_v36 = vsel %vm6_vm0, %v405_v34, %v404_v33  ;;  %v406_v37 = vld [vmem:[%s736_s0 + $0x1] ss:$16 sm:%s335_s19]   ;;  %322 = vrot.lane.b32.xlu1 %v321_v35, %s436_s26  ;;  %s8_s28 = smov 48  ;;  %s12_s2 = smov 192 }
  0x27   :  { %v407_v38 = vld [vmem:[%s736_s0 + $0x1] ss:$16 sm:%s340_s20]   ;;  %v338_v39 = vsel %vm10_vm1, %v406_v37, %v333_v36  ;;  %v5_v42 = vld [vmem:[%s736_s0] ss:$16 sm:%s4_s27]   ;;  %s437_s7 = smov 8  }
  0x28   :  { %v343_v41 = vsel %vm14_vm2, %v407_v38, %v338_v39  ;;  %v9_v43 = vld [vmem:[%s736_s0] ss:$16 sm:%s8_s28]   ;;  %v7_v44 = vsel %vm6_vm0, %v5_v42, %v3_v40  ;;  %vm302_vm0 = vcmask 261312  }
  0x29   :  { %344 = vrot.lane.b32.xlu0 %v343_v41, %s437_s7  ;;  %v13_v45 = vld [vmem:[%s736_s0] ss:$16 sm:%s12_s2]   ;;  %v11_v46 = vsel %vm10_vm1, %v9_v43, %v7_v44  ;;  %vm324_vm1 = vcmask 195712  }
  0x2a   :  { %v15_v47 = vsel %vm14_vm2, %v13_v45, %v11_v46  ;;  %vm346_vm2 = vcmask 130112  }
  0x2b   :  { %17 = vst.msk [vmem:[%s737_s1] sm:$0xff] %vm16_vm3, %v15_v47  }
  0x78   :  { %v37_v48 = vpop.permute.xlu0 %36  }
  0x79   :  { %39 = vst.msk [vmem:[%s737_s1] sm:$0xff] %vm38_vm4, %v37_v48  }
  0x7a   :  { %v81_v49 = vpop.permute.xlu1 %80  }
  0x7d   :  { %v59_v50 = vpop.permute.xlu0 %58  }
  0x7e   :  { %61 = vst.msk [vmem:[%s737_s1] sm:$0xff] %vm60_vm5, %v59_v50  }
  0x7f   :  { %83 = vst.msk [vmem:[%s737_s1] sm:$0xff] %vm82_vm6, %v81_v49   ;;  %v103_v51 = vpop.permute.xlu1 %102  }
  0x80   :  { %105 = vst.msk [vmem:[%s737_s1] sm:$0xff] %vm104_vm7, %v103_v51  }
  0x82   :  { %v125_v52 = vpop.permute.xlu0 %124  }
  0x83   :  { %127 = vst.msk [vmem:[%s737_s1] sm:$0xff] %vm126_vm8, %v125_v52  }
  0x84   :  { %v147_v53 = vpop.permute.xlu1 %146  }
  0x85   :  { %149 = vst.msk [vmem:[%s737_s1] sm:$0xff] %vm148_vm9, %v147_v53  }
  0x87   :  { %v169_v54 = vpop.permute.xlu0 %168  }
  0x88   :  { %171 = vst.msk [vmem:[%s737_s1] sm:$0xff] %vm170_vm10, %v169_v54  }
  0x89   :  { %v191_v55 = vpop.permute.xlu1 %190  }
  0x8a   :  { %193 = vst.msk [vmem:[%s737_s1] sm:$0xff] %vm192_vm11, %v191_v55  }
  0x8c   :  { %v213_v56 = vpop.permute.xlu0 %212  }
  0x8d   :  { %215 = vst.msk [vmem:[%s737_s1] sm:$0xff] %vm214_vm12, %v213_v56  }
  0x8e   :  { %v235_v57 = vpop.permute.xlu1 %234  }
  0x8f   :  { %237 = vst.msk [vmem:[%s737_s1] sm:$0xff] %vm236_vm13, %v235_v57  }
  0x91   :  { %v257_v58 = vpop.permute.xlu0 %256  }
  0x92   :  { %259 = vst.msk [vmem:[%s737_s1] sm:$0xff] %vm258_vm14, %v257_v58  }
  0x93   :  { %v279_v59 = vpop.permute.xlu1 %278  }
  0x94   :  { %281 = vst.msk [vmem:[%s737_s1] sm:$0xff] %vm280_vm15, %v279_v59  }
  0x96   :  { %v301_v60 = vpop.permute.xlu0 %300  }
  0x97   :  { %303 = vst.msk [vmem:[%s737_s1] sm:$0xff] %vm302_vm0, %v301_v60  }
  0x98   :  { %v323_v61 = vpop.permute.xlu1 %322  }
  0x99   :  { %325 = vst.msk [vmem:[%s737_s1] sm:$0xff] %vm324_vm1, %v323_v61  }
  0x9b   :  { %v345_v62 = vpop.permute.xlu0 %344  }
  0x9c   :  { %347 = vst.msk [vmem:[%s737_s1] sm:$0xff] %vm346_vm2, %v345_v62  }

// kernel: conv_block_forward.1
= control target key start
LH: loop header
LB: loop body
LE: loop exit
PB: predicated region body
PF: predicated region fallthrough
CT: control target
= control target key end

     0   :  { %v2069_v3 = vmov 0.0   ;;  %vm2071_vm0 = vmmov 0   ;;  %vm375_vm1 = vcmask 64512   ;;  %s2681_s1 = inlined_call_operand.vmem [shape: f32[384,128], index: 1, kind: input, shape index: {}]   ;;  %s2682_s0 = inlined_call_operand.vmem [shape: f32[2,16,128], index: 0, kind: input, shape index: {}]   ;;  %s2683_s3 = inlined_call_operand.vmem [shape: f32[128,8], index: 3, kind: input, shape index: {}]   ;;  %s2684_s4 = inlined_call_operand.vmem [shape: f32[8,128], index: 4, kind: input, shape index: {}]   ;;  %s2685_s2 = inlined_call_operand.vmem [shape: f32[384,128], index: 2, kind: input, shape index: {}]   ;;  %s2686_s5 = inlined_call_operand.vmem [shape: f32[1,8], index: 5, kind: input, shape index: {}]   ;;  %s2687_s6 = inlined_call_operand.vmem [shape: f32[1,8], index: 6, kind: input, shape index: {}]   ;;  %s2688_s7 = inlined_call_operand.vmem [shape: f32[1,8], index: 7, kind: input, shape index: {}]   ;;  %s2689_s8 = inlined_call_operand.vmem [shape: f32[1,8], index: 8, kind: input, shape index: {}]   ;;  %s2690_s9 = inlined_call_operand.vmem [shape: f32[2,16,128], index: 9, kind: output, shape index: {}]  }
   0x1   :  { %v91_v0 = vld [vmem:[%s2681_s1 + $0x80] sm:$0xff]  ;;  %v92_v1 = vld [vmem:[%s2681_s1 + $0x88] sm:$0xff]  ;;  %49 = vst [vmem:[#allocation2] sm:$0xff] %v2069_v3  ;;  %50 = vst [vmem:[#allocation2 + $0x8] sm:$0xff] %v2069_v3 }
   0x2   :  { %v75_v2 = vld [vmem:[%s2681_s1] sm:$0xff]  ;;  %51 = vst [vmem:[#allocation2 + $0x10] sm:$0x3] %v2069_v3  ;;  %52 = vst [vmem:[#allocation2 + $0x18] sm:$0xff] %v2069_v3  ;;  %v1838_v4 = vpack.c.bf16 %v92_v1, %v91_v0  ;;  %v76_v5 = vld [vmem:[%s2681_s1 + $0x8] sm:$0xff] }
   0x3   :  { %53 = vst [vmem:[#allocation2 + $0x20] sm:$0xff] %v2069_v3  ;;  %54 = vst [vmem:[#allocation2 + $0x28] sm:$0x3] %v2069_v3  ;;  %v107_v6 = vld [vmem:[%s2681_s1 + $0x100] sm:$0xff]  ;;  %v108_v7 = vld [vmem:[%s2681_s1 + $0x108] sm:$0xff]  ;;  %v1840_v8 = vpack.c.bf16 %v76_v5, %v75_v2 }
   0x4   :  { %712 = vst [vmem:[#allocation3] sm:$0xff] %v2069_v3  ;;  %713 = vst [vmem:[#allocation3 + $0x8] sm:$0xff] %v2069_v3  ;;  %v1870_v9 = vpack.c.bf16 %v108_v7, %v107_v6  ;;  %v93_v10 = vld [vmem:[%s2681_s1 + $0x90] sm:$0xff]  ;;  %v94_v11 = vld [vmem:[%s2681_s1 + $0x98] sm:$0xff]  ;;  %1839 = vmatprep.subr.bf16.mxu0 %v1838_v4 }
   0x5   :  { %714 = vst [vmem:[#allocation3 + $0x10] sm:$0x3] %v2069_v3  ;;  %715 = vst [vmem:[#allocation3 + $0x18] sm:$0xff] %v2069_v3  ;;  %v77_v12 = vld [vmem:[%s2681_s1 + $0x10] sm:$0xff]  ;;  %v1842_v13 = vpack.c.bf16 %v94_v11, %v93_v10  ;;  %v78_v14 = vld [vmem:[%s2681_s1 + $0x18] sm:$0xff]  ;;  %1841 = vmatpush3.bf16.msra.mxu0 %v1840_v8 }
   0x6   :  { %716 = vst [vmem:[#allocation3 + $0x20] sm:$0xff] %v2069_v3  ;;  %717 = vst [vmem:[#allocation3 + $0x28] sm:$0x3] %v2069_v3  ;;  %v109_v15 = vld [vmem:[%s2681_s1 + $0x110] sm:$0xff]  ;;  %v110_v16 = vld [vmem:[%s2681_s1 + $0x118] sm:$0xff]  ;;  %1871 = vmatprep.subr.bf16.mxu1 %v1870_v9  ;;  %v1844_v17 = vpack.c.bf16 %v78_v14, %v77_v12 }
   0x7   :  { %v1874_v18 = vpack.c.bf16 %v110_v16, %v109_v15  ;;  %v95_v19 = vld [vmem:[%s2681_s1 + $0xa0] sm:$0xff]  ;;  %v96_v20 = vld [vmem:[%s2681_s1 + $0xa8] sm:$0xff]  ;;  %1873 = vmatpush3.bf16.msra.mxu1 %v1870_v9  ;;  %1843 = vmatprep.subr.bf16.mxu0 %v1842_v13  ;;  %v97_v27 = vld [vmem:[%s2681_s1 + $0xb0] sm:$0xff] }
   0x8   :  { %v79_v21 = vld [vmem:[%s2681_s1 + $0x20] sm:$0xff]  ;;  %v1846_v22 = vpack.c.bf16 %v96_v20, %v95_v19  ;;  %v80_v23 = vld [vmem:[%s2681_s1 + $0x28] sm:$0xff]  ;;  %v98_v28 = vld [vmem:[%s2681_s1 + $0xb8] sm:$0xff] }
   0x9   :  { %v111_v24 = vld [vmem:[%s2681_s1 + $0x120] sm:$0xff]  ;;  %v112_v25 = vld [vmem:[%s2681_s1 + $0x128] sm:$0xff]  ;;  %1875 = vmatprep.subr.bf16.mxu1 %v1874_v18  ;;  %v113_v29 = vld [vmem:[%s2681_s1 + $0x130] sm:$0xff]  ;;  %1845 = vmatpush3.bf16.msra.mxu0 %v1844_v17  ;;  %v1848_v31 = vpack.c.bf16 %v80_v23, %v79_v21  ;;  %v1850_v32 = vpack.c.bf16 %v98_v28, %v97_v27 }
   0xa   :  { %v1878_v26 = vpack.c.bf16 %v112_v25, %v111_v24  ;;  %v114_v30 = vld [vmem:[%s2681_s1 + $0x138] sm:$0xff]  ;;  %1847 = vmatprep.subr.bf16.mxu0 %v1846_v22  ;;  %v81_v33 = vld [vmem:[%s2681_s1 + $0x30] sm:$0xff]  ;;  %v99_v36 = vld [vmem:[%s2681_s1 + $0xc0] sm:$0xff]  ;;  %v2070_v25 = vmov 0.0|0.0  }
   0xb   :  { %1877 = vmatpush3.bf16.msra.mxu1 %v1874_v18  ;;  %v82_v34 = vld [vmem:[%s2681_s1 + $0x38] sm:$0xff]  ;;  %v1882_v35 = vpack.c.bf16 %v114_v30, %v113_v29  ;;  %v100_v37 = vld [vmem:[%s2681_s1 + $0xc8] sm:$0xff]  ;;  %v115_v38 = vld [vmem:[%s2681_s1 + $0x140] sm:$0xff] }
   0xc   :  { %1879 = vmatprep.subr.bf16.mxu1 %v1878_v26  ;;  %v116_v39 = vld [vmem:[%s2681_s1 + $0x148] sm:$0xff]  ;;  %v1852_v40 = vpack.c.bf16 %v82_v34, %v81_v33  ;;  %v1854_v41 = vpack.c.bf16 %v100_v37, %v99_v36  ;;  %v83_v42 = vld [vmem:[%s2681_s1 + $0x40] sm:$0xff]  ;;  %v101_v45 = vld [vmem:[%s2681_s1 + $0xd0] sm:$0xff] }
   0xd   :  { %1849 = vmatpush3.bf16.msra.mxu0 %v1848_v31  ;;  %v84_v43 = vld [vmem:[%s2681_s1 + $0x48] sm:$0xff]  ;;  %v1886_v44 = vpack.c.bf16 %v116_v39, %v115_v38  ;;  %v102_v46 = vld [vmem:[%s2681_s1 + $0xd8] sm:$0xff]  ;;  %v117_v47 = vld [vmem:[%s2681_s1 + $0x150] sm:$0xff] }
   0xe   :  { %1851 = vmatprep.subr.bf16.mxu0 %v1850_v32  ;;  %v118_v48 = vld [vmem:[%s2681_s1 + $0x158] sm:$0xff]  ;;  %v1856_v49 = vpack.c.bf16 %v84_v43, %v83_v42  ;;  %v55_v50 = vld [vmem:[%s2682_s0] sm:$0xff]  ;;  %v56_v51 = vld [vmem:[%s2682_s0 + $0x8] sm:$0xff]  ;;  %v1858_v53 = vpack.c.bf16 %v102_v46, %v101_v45 }
   0xf   :  { %1881 = vmatpush3.bf16.msra.mxu1 %v1878_v26  ;;  %v57_v52 = vld [vmem:[%s2682_s0 + $0x10] sm:$0xff]  ;;  %v86_v55 = vld [vmem:[%s2681_s1 + $0x58] sm:$0xff]  ;;  %59 = vst [vmem:[#allocation2 + $0x1] sm:$0xff] %v55_v50  ;;  %60 = vst [vmem:[#allocation2 + $0x9] sm:$0xff] %v56_v51  ;;  %v1890_v57 = vpack.c.bf16 %v118_v48, %v117_v47  ;;  %187 = vmatprep.mubr.f32.mxu0 %v55_v50 }
  0x10   :  { %1883 = vmatprep.subr.bf16.mxu1 %v1882_v35  ;;  %v85_v54 = vld [vmem:[%s2681_s1 + $0x50] sm:$0xff]  ;;  %61 = vst [vmem:[#allocation2 + $0x19] sm:$0xff] %v57_v52  ;;  %v58_v56 = vld [vmem:[%s2682_s0 + $0x18] sm:$0xff]  ;;  %v103_v58 = vld [vmem:[%s2681_s1 + $0xe0] sm:$0xff] }
  0x11   :  { %1853 = vmatpush3.bf16.msra.mxu0 %v1852_v40  ;;  %v104_v59 = vld [vmem:[%s2681_s1 + $0xe8] sm:$0xff]  ;;  %62 = vst [vmem:[#allocation2 + $0x21] sm:$0xff] %v58_v56  ;;  %v119_v60 = vld [vmem:[%s2681_s1 + $0x160] sm:$0xff]  ;;  %v1860_v62 = vpack.c.bf16 %v86_v55, %v85_v54  ;;  %v105_v4 = vld [vmem:[%s2681_s1 + $0xf0] sm:$0xff] }
  0x12   :  { %1855 = vmatprep.subr.bf16.mxu0 %v1854_v41  ;;  %v120_v61 = vld [vmem:[%s2681_s1 + $0x168] sm:$0xff]  ;;  %v1862_v63 = vpack.c.bf16 %v104_v59, %v103_v58  ;;  %v87_v0 = vld [vmem:[%s2681_s1 + $0x60] sm:$0xff]  ;;  %v106_v5 = vld [vmem:[%s2681_s1 + $0xf8] sm:$0xff] }
  0x13   :  { %1885 = vmatpush3.bf16.msra.mxu1 %v1882_v35  ;;  %v88_v1 = vld [vmem:[%s2681_s1 + $0x68] sm:$0xff]  ;;  %v1894_v2 = vpack.c.bf16 %v120_v61, %v119_v60  ;;  %v121_v6 = vld [vmem:[%s2681_s1 + $0x170] sm:$0xff]  ;;  %v122_v7 = vld [vmem:[%s2681_s1 + $0x178] sm:$0xff]  ;;  %v1866_v10 = vpack.c.bf16 %v106_v5, %v105_v4 }
  0x14   :  { %1887 = vmatprep.subr.bf16.mxu1 %v1886_v44  ;;  %v1864_v8 = vpack.c.bf16 %v88_v1, %v87_v0  ;;  %v89_v11 = vld [vmem:[%s2681_s1 + $0x70] sm:$0xff]  ;;  %v90_v12 = vld [vmem:[%s2681_s1 + $0x78] sm:$0xff]  ;;  %v1898_v13 = vpack.c.bf16 %v122_v7, %v121_v6  ;;  %v32_v22 = vld [vmem:[%s2683_s3] sm:$0xff] }
  0x15   :  { %1857 = vmatpush3.bf16.msra.mxu0 %v1856_v49  ;;  %v1868_v14 = vpack.c.bf16 %v90_v12, %v89_v11  ;;  %v33_v23 = vld [vmem:[%s2683_s3 + $0x8] sm:$0xff]  ;;  %v34_v26 = vld [vmem:[%s2683_s3 + $0x10] sm:$0xff]  ;;  %v35_v27 = vld [vmem:[%s2683_s3 + $0x18] sm:$0xff] }
  0x16   :  { %1859 = vmatprep.subr.bf16.mxu0 %v1858_v53  ;;  %v71_v9 = vld [vmem:[#allocation2 + $0x2] sm:$0xff]  ;;  %v72_v16 = vld [vmem:[#allocation2 + $0xa] sm:$0xff]  ;;  %v2297_v24 = vpack.c.bf16 %v33_v23, %v32_v22  ;;  %v2308_v28 = vpack.c.bf16 %v35_v27, %v34_v26  ;;  %v39_v33 = vld [vmem:[%s2683_s3 + $0x38] sm:$0xff] }
  0x17   :  { %1889 = vmatpush3.bf16.msra.mxu1 %v1886_v44  ;;  %1624 = vmatprep.mubr.f32.mxu1 %v71_v9  ;;  %v63_v15 = vld [vmem:[#allocation2] sm:$0xff]  ;;  %v64_v18 = vld [vmem:[#allocation2 + $0x8] sm:$0xff]  ;;  %v65_v20 = vld [vmem:[#allocation2 + $0x18] sm:$0xff] }
  0x18   :  { %1891 = vmatprep.subr.bf16.mxu1 %v1890_v57  ;;  %v73_v17 = vld [vmem:[#allocation2 + $0x1a] sm:$0xff]  ;;  %v74_v19 = vld [vmem:[#allocation2 + $0x22] sm:$0xff]  ;;  %v38_v32 = vld [vmem:[%s2683_s3 + $0x30] sm:$0xff] }
  0x19   :  { %1861 = vmatpush3.bf16.msra.mxu0 %v1860_v62  ;;  %v66_v21 = vld [vmem:[#allocation2 + $0x20] sm:$0xff]  ;;  %v37_v30 = vld [vmem:[%s2683_s3 + $0x28] sm:$0xff]  ;;  %v2328_v34 = vpack.c.bf16 %v39_v33, %v38_v32  ;;  %v42_v38 = vld [vmem:[%s2683_s3 + $0x50] sm:$0xff] }
  0x1a   :  { %1863 = vmatprep.subr.bf16.mxu0 %v1862_v63  ;;  %v36_v29 = vld [vmem:[%s2683_s3 + $0x20] sm:$0xff]  ;;  %v41_v36 = vld [vmem:[%s2683_s3 + $0x48] sm:$0xff]  ;;  %v43_v39 = vld [vmem:[%s2683_s3 + $0x58] sm:$0xff] }
  0x1b   :  { %1893 = vmatpush3.bf16.msra.mxu1 %v1890_v57  ;;  %v2318_v31 = vpack.c.bf16 %v37_v30, %v36_v29  ;;  %v40_v35 = vld [vmem:[%s2683_s3 + $0x40] sm:$0xff]  ;;  %v2348_v40 = vpack.c.bf16 %v43_v39, %v42_v38  ;;  %v45_v42 = vld [vmem:[%s2683_s3 + $0x68] sm:$0xff]  ;;  %v46_v44 = vld [vmem:[%s2683_s3 + $0x70] sm:$0xff] }
  0x1c   :  { %1895 = vmatprep.subr.bf16.mxu1 %v1894_v2  ;;  %v2338_v37 = vpack.c.bf16 %v41_v36, %v40_v35  ;;  %v44_v41 = vld [vmem:[%s2683_s3 + $0x60] sm:$0xff]  ;;  %v47_v45 = vld [vmem:[%s2683_s3 + $0x78] sm:$0xff] }
  0x1d   :  { %1865 = vmatpush3.bf16.msra.mxu0 %v1864_v8  ;;  %v2358_v43 = vpack.c.bf16 %v45_v42, %v44_v41  ;;  %v2368_v46 = vpack.c.bf16 %v47_v45, %v46_v44  ;;  %v2379_v47 = vld [vmem:[%s2684_s4] sm:$0xff] }
  0x1e   :  { %1867 = vmatprep.subr.bf16.mxu0 %v1866_v10 }
  0x1f   :  { %1897 = vmatpush3.bf16.msra.mxu1 %v1894_v2 }
  0x20   :  { %1899 = vmatprep.subr.bf16.mxu1 %v1898_v13 }
  0x21   :  { %1869 = vmatpush3.bf16.msra.mxu0 %v1868_v14 }
  0x22   :  { %1902 = vmatprep.subr.bf16.mxu0 %v2070_v25 }
  0x23   :  { %1901 = vmatpush3.bf16.msra.mxu1 %v1898_v13 }
  0x24   :  { %1665 = vmatprep.subr.mxu1 %v2069_v3  ;;  %188 = vmatmul.mubr.f32.vlgmr.msra.gmra.mrb[0].mxu0 %v63_v15 }
  0x25   :  { %192 = vmatprep.mubr.f32.mxu0 %v56_v51  ;;  %1904 = vmatpush3.bf16.msra.mxu0 %v2297_v24 }
  0x26   :  { %1625 = vmatmul.mubr.f32.vlgmr.msra.gmra.mrb[0].mxu1 %v72_v16  ;;  %1905 = vmatprep.subr.bf16.mxu0 %v2070_v25 }
  0x27   :  { %1627 = vmatprep.mubr.f32.mxu1 %v73_v17  ;;  %1666 = vmatpush3.msra.mxu1 %v2379_v47  ;;  %v449_v17 = vlaneseq }
  0x28   :  { %193 = vmatmul.mubr.f32.gmra.mrb[2].mxu0 %v64_v18  ;;  %1926 = vmatprep.subr.bf16.mxu1 %v2070_v25 }
  0x29   :  { %197 = vmatprep.mubr.f32.mxu0 %v57_v52  ;;  %1907 = vmatpush3.bf16.msra.mxu0 %v2308_v28  ;;  %v450_v18 = vshrl.u32 %v449_v17, 7 }
  0x2a   :  { %1628 = vmatmul.mubr.f32.gmra.mrb[2].mxu1 %v74_v19  ;;  %1908 = vmatprep.subr.bf16.mxu0 %v2070_v25 }
  0x2b   :  { %1667 = vmatprep.mubr.msk.f32.mxu1 %vm2071_vm0, %v2069_v3  ;;  %v2420_v19 = vsub.s32 0, %v450_v18 }
  0x2c   :  { %198 = vmatmul.mubr.f32.gmra.mrb[4].mxu0 %v65_v20 }
  0x2d   :  { %202 = vmatprep.mubr.f32.mxu0 %v58_v56  ;;  %1910 = vmatpush3.bf16.msra.mxu0 %v2318_v31 }
  0x2e   :  { %1911 = vmatprep.subr.bf16.mxu0 %v2070_v25 }
  0x30   :  { %203 = vmatmul.mubr.f32.gmra.mrb[6].mxu0 %v66_v21 }
  0x31   :  { %1913 = vmatpush3.bf16.msra.mxu0 %v2328_v34  ;;  %1662 = vmatprep.mubr.msk.f32.mxu0 %vm2071_vm0, %v2069_v3 }
  0x32   :  { %1914 = vmatprep.subr.bf16.mxu0 %v2070_v25 }
  0x35   :  { %1916 = vmatpush3.bf16.msra.mxu0 %v2338_v37 }
  0x36   :  { %1917 = vmatprep.subr.bf16.mxu0 %v2070_v25 }
  0x39   :  { %1919 = vmatpush3.bf16.msra.mxu0 %v2348_v40 }
  0x3a   :  { %1920 = vmatprep.subr.bf16.mxu0 %v2070_v25 }
  0x3d   :  { %1922 = vmatpush3.bf16.msra.mxu0 %v2358_v43 }
  0x3e   :  { %1923 = vmatprep.subr.bf16.mxu0 %v2070_v25 }
  0x41   :  { %1925 = vmatpush3.bf16.msra.mxu0 %v2368_v46 }
  0x42   :  { %1705 = vmatprep.subr.mxu0 %v2069_v3 }
  0xf7   :  { %v1416_v48 = vpop.f32.mrb[0].mxu0 }
  0xf8   :  { %v1417_v49 = vpop.f32.mrb[1].mxu0 }
  0xf9   :  { %v1626_v50 = vpop.f32.mrb[0].mxu1  ;;  %v1418_v51 = vadd.f32 %v1417_v49, %v1416_v48 }
  0xfa   :  { %v274_v52 = vpop.f32.mrb[1].mxu1 }
  0xfb   :  { %v2383_v53 = vadd.f32 %v1418_v51, %v274_v52  ;;  %v1419_v54 = vpop.f32.mrb[2].mxu0  ;;  %v767_v51 = vld [vmem:[%s2685_s2 + $0x108] sm:$0xff] }
  0xfc   :  { %v1420_v55 = vpop.f32.mrb[3].mxu0 }
  0xfd   :  { %v1629_v56 = vpop.f32.mrb[2].mxu1  ;;  %v1421_v57 = vadd.f32 %v1420_v55, %v1419_v54  ;;  %v768_v54 = vld [vmem:[%s2685_s2 + $0x110] sm:$0xff]  ;;  %v769_v55 = vld [vmem:[%s2685_s2 + $0x118] sm:$0xff] }
  0xfe   :  { %v284_v58 = vpop.f32.mrb[3].mxu1 }
  0xff   :  { %v2385_v59 = vadd.f32 %v1626_v50, %v1421_v57  ;;  %v1422_v60 = vpop.f32.mrb[4].mxu0  ;;  %v766_v50 = vld [vmem:[%s2685_s2 + $0x100] sm:$0xff] }
 0x100   :  { %v1423_v61 = vpop.f32.mrb[5].mxu0  ;;  %v1982_v52 = vpack.c.bf16 %v767_v51, %v766_v50  ;;  %v770_v57 = vld [vmem:[%s2685_s2 + $0x120] sm:$0xff] }
 0x101   :  { %v1424_v62 = vadd.f32 %v1423_v61, %v1422_v60  ;;  %v295_v2 = vadd.f32 %v2385_v59, %v2383_v53  ;;  %v774_v51 = vld [vmem:[%s2685_s2 + $0x140] sm:$0xff] }
 0x103   :  { %v2387_v63 = vadd.f32 %v1424_v62, %v284_v58  ;;  %v1425_v0 = vpop.f32.mrb[6].mxu0  ;;  %v771_v58 = vld [vmem:[%s2685_s2 + $0x128] sm:$0xff] }
 0x104   :  { %v1426_v1 = vpop.f32.mrb[7].mxu0  ;;  %v1990_v60 = vpack.c.bf16 %v771_v58, %v770_v57  ;;  %v760_v58 = vld [vmem:[%s2685_s2 + $0xd0] sm:$0xff] }
 0x105   :  { %v1427_v4 = vadd.f32 %v1426_v1, %v1425_v0  ;;  %v296_v5 = vadd.f32 %v295_v2, %v2387_v63  ;;  %v293_v2 = vld [vmem:[%s2686_s5] sm:$0x1] }
 0x107   :  { %v2392_v6 = vadd.f32 %v1629_v56, %v1427_v4  ;;  %v1986_v56 = vpack.c.bf16 %v769_v55, %v768_v54  ;;  %v750_v4 = vld [vmem:[%s2685_s2 + $0x80] sm:$0xff] }
 0x108   :  { %v742_v54 = vld [vmem:[%s2685_s2 + $0x40] sm:$0xff] }
 0x109   :  { %v297_v7 = vadd.f32 %v296_v5, %v2392_v6  ;;  %v751_v5 = vld [vmem:[%s2685_s2 + $0x88] sm:$0xff] }
 0x10b   :  { %v298_v8 = vrot.slane %v297_v7, 4 }
 0x10d   :  { %v299_v9 = vadd.f32 %v298_v8, %v297_v7 }
 0x10f   :  { %v300_v10 = vrot.slane %v299_v9, 2 }
 0x111   :  { %v301_v11 = vadd.f32 %v300_v10, %v299_v9  ;;  %v1950_v9 = vpack.c.bf16 %v751_v5, %v750_v4  ;;  %v734_v10 = vld [vmem:[%s2685_s2] sm:$0xff]  ;;  %v745_v4 = vld [vmem:[%s2685_s2 + $0x58] sm:$0xff] }
 0x113   :  { %v302_v12 = vrot.slane %v301_v11, 1 }
 0x115   :  { %v303_v13 = vadd.f32 %v302_v12, %v301_v11  ;;  %v735_v11 = vld [vmem:[%s2685_s2 + $0x8] sm:$0xff]  ;;  %v294_v12 = vld [vmem:[%s2687_s6] sm:$0x1] }
 0x116   :  { %v1952_v17 = vpack.c.bf16 %v735_v11, %v734_v10  ;;  %v778_v10 = vld [vmem:[%s2685_s2 + $0x160] sm:$0xff]  ;;  %v779_v11 = vld [vmem:[%s2685_s2 + $0x168] sm:$0xff] }
 0x117   :  { %1663 = vmatmul.mubr.f32.vlgmr.msra.gmra.mrb[8].mxu0 %v303_v13  ;;  %v752_v13 = vld [vmem:[%s2685_s2 + $0x90] sm:$0xff] }
 0x118   :  { %1706 = vmatpush3.msra.mxu0 %v2379_v47  ;;  %1707 = vmatprep.mubr.msk.f32.mxu0 %vm2071_vm0, %v2069_v3 }
 0x119   :  { %1710 = vmatprep.subr.mxu0 %v2069_v3 }
 0x1ea   :  { %v370_v14 = vpop.f32.mrb[8].mxu0 }
 0x1eb   :  { %v2399_v15 = vmul.f32 0.001953125, %v370_v14  ;;  %v1664_v16 = vpop.f32.mrb[9].mxu0  ;;  %v753_v14 = vld [vmem:[%s2685_s2 + $0x98] sm:$0xff] }
 0x1ed   :  { %1668 = vmatmul.mubr.msk.f32.vlgmr.msra.gmra.mrb[4].mxu1 %vm375_vm1, %v2399_v15 }
 0x1ee   :  { %1928 = vmatpush3.bf16.msra.mxu1 %v2297_v24  ;;  %1702 = vmatprep.mubr.msk.f32.mxu1 %vm2071_vm0, %v2069_v3 }
 0x1ef   :  { %1929 = vmatprep.subr.bf16.mxu1 %v2070_v25 }
 0x1f2   :  { %1931 = vmatpush3.bf16.msra.mxu1 %v2308_v28 }
 0x1f3   :  { %1932 = vmatprep.subr.bf16.mxu1 %v2070_v25 }
 0x1f6   :  { %1934 = vmatpush3.bf16.msra.mxu1 %v2318_v31 }
 0x1f7   :  { %1935 = vmatprep.subr.bf16.mxu1 %v2070_v25 }
 0x1fa   :  { %1937 = vmatpush3.bf16.msra.mxu1 %v2328_v34 }
 0x1fb   :  { %1938 = vmatprep.subr.bf16.mxu1 %v2070_v25 }
 0x1fe   :  { %1940 = vmatpush3.bf16.msra.mxu1 %v2338_v37 }
 0x1ff   :  { %1941 = vmatprep.subr.bf16.mxu1 %v2070_v25 }
 0x202   :  { %1943 = vmatpush3.bf16.msra.mxu1 %v2348_v40 }
 0x203   :  { %1944 = vmatprep.subr.bf16.mxu1 %v2070_v25 }
 0x206   :  { %1946 = vmatpush3.bf16.msra.mxu1 %v2358_v43 }
 0x207   :  { %1947 = vmatprep.subr.bf16.mxu1 %v2070_v25 }
 0x20a   :  { %1949 = vmatpush3.bf16.msra.mxu1 %v2368_v46 }
 0x20b   :  { %1983 = vmatprep.subr.bf16.mxu1 %v1982_v52 }
 0x2c0   :  { %v445_v20 = vpop.f32.mrb[4].mxu1 }
 0x2c1   :  { %v452_v21 = vrot.slane %v445_v20, %v2420_v19  ;;  %v1669_v22 = vpop.f32.mrb[5].mxu1  ;;  %v1954_v20 = vpack.c.bf16 %v753_v14, %v752_v13  ;;  %v2006_v13 = vpack.c.bf16 %v779_v11, %v778_v10  ;;  %v747_v14 = vld [vmem:[%s2685_s2 + $0x68] sm:$0xff] }
 0x2c2   :  { %v737_v22 = vld [vmem:[%s2685_s2 + $0x18] sm:$0xff] }
 0x2c3   :  { %v453_v23 = vsub.f32 %v2383_v53, %v452_v21  ;;  %v454_v26 = vsub.f32 %v2385_v59, %v452_v21  ;;  %v455_v27 = vsub.f32 %v2387_v63, %v452_v21  ;;  %v456_v29 = vsub.f32 %v2392_v6, %v452_v21  ;;  %v736_v21 = vld [vmem:[%s2685_s2 + $0x10] sm:$0xff] }
 0x2c5   :  { %v457_v30 = vmul.f32 %v453_v23, %v453_v23  ;;  %v458_v32 = vmul.f32 %v454_v26, %v454_v26  ;;  %v459_v33 = vmul.f32 %v455_v27, %v455_v27  ;;  %v460_v36 = vmul.f32 %v456_v29, %v456_v29  ;;  %v755_v23 = vld [vmem:[%s2685_s2 + $0xa8] sm:$0xff]  ;;  %v738_v29 = vld [vmem:[%s2685_s2 + $0x20] sm:$0xff] }
 0x2c6   :  { %v1956_v26 = vpack.c.bf16 %v737_v22, %v736_v21  ;;  %v781_v22 = vld [vmem:[%s2685_s2 + $0x178] sm:$0xff] }
 0x2c7   :  { %v461_v35 = vadd.f32 %v458_v32, %v457_v30  ;;  %v739_v30 = vld [vmem:[%s2685_s2 + $0x28] sm:$0xff] }
 0x2c8   :  { %v1960_v32 = vpack.c.bf16 %v739_v30, %v738_v29 }
 0x2c9   :  { %v462_v38 = vadd.f32 %v461_v35, %v459_v33  ;;  %v756_v33 = vld [vmem:[%s2685_s2 + $0xb0] sm:$0xff]  ;;  %v757_v35 = vld [vmem:[%s2685_s2 + $0xb8] sm:$0xff] }
 0x2cb   :  { %v463_v39 = vadd.f32 %v462_v38, %v460_v36  ;;  %v1962_v36 = vpack.c.bf16 %v757_v35, %v756_v33  ;;  %v772_v38 = vld [vmem:[%s2685_s2 + $0x130] sm:$0xff] }
 0x2cd   :  { %v464_v41 = vrot.slane %v463_v39, 4 }
 0x2cf   :  { %v465_v42 = vadd.f32 %v464_v41, %v463_v39  ;;  %v773_v39 = vld [vmem:[%s2685_s2 + $0x138] sm:$0xff]  ;;  %v740_v41 = vld [vmem:[%s2685_s2 + $0x30] sm:$0xff] }
 0x2d1   :  { %v466_v44 = vrot.slane %v465_v42, 2 }
 0x2d3   :  { %v467_v45 = vadd.f32 %v466_v44, %v465_v42  ;;  %v1994_v42 = vpack.c.bf16 %v773_v39, %v772_v38  ;;  %v741_v44 = vld [vmem:[%s2685_s2 + $0x38] sm:$0xff] }
 0x2d5   :  { %v468_v48 = vrot.slane %v467_v45, 1 }
 0x2d7   :  { %v469_v49 = vadd.f32 %v468_v48, %v467_v45  ;;  %v1964_v45 = vpack.c.bf16 %v741_v44, %v740_v41  ;;  %v758_v48 = vld [vmem:[%s2685_s2 + $0xc0] sm:$0xff] }
 0x2d9   :  { %1703 = vmatmul.mubr.f32.vlgmr.msra.gmra.mrb[6].mxu1 %v469_v49  ;;  %v759_v49 = vld [vmem:[%s2685_s2 + $0xc8] sm:$0xff] }
 0x2da   :  { %1985 = vmatpush3.bf16.msra.mxu1 %v1982_v52  ;;  %v1966_v50 = vpack.c.bf16 %v759_v49, %v758_v48  ;;  %v775_v52 = vld [vmem:[%s2685_s2 + $0x148] sm:$0xff] }
 0x2db   :  { %1987 = vmatprep.subr.bf16.mxu1 %v1986_v56  ;;  %v1998_v55 = vpack.c.bf16 %v775_v52, %v774_v51 }
 0x2de   :  { %1989 = vmatpush3.bf16.msra.mxu1 %v1986_v56  ;;  %v743_v56 = vld [vmem:[%s2685_s2 + $0x48] sm:$0xff] }
 0x2df   :  { %1991 = vmatprep.subr.bf16.mxu1 %v1990_v60  ;;  %v1968_v57 = vpack.c.bf16 %v743_v56, %v742_v54 }
 0x2e2   :  { %1993 = vmatpush3.bf16.msra.mxu1 %v1990_v60  ;;  %v761_v60 = vld [vmem:[%s2685_s2 + $0xd8] sm:$0xff] }
 0x2e3   :  { %1995 = vmatprep.subr.bf16.mxu1 %v1994_v42 }
 0x2e6   :  { %1997 = vmatpush3.bf16.msra.mxu1 %v1994_v42 }
 0x2e7   :  { %1999 = vmatprep.subr.bf16.mxu1 %v1998_v55 }
 0x2ea   :  { %2001 = vmatpush3.bf16.msra.mxu1 %v1998_v55 }
 0x3ac   :  { %v536_v61 = vpop.f32.mrb[6].mxu1 }
 0x3ad   :  { %v540_v62 = vmul.f32 0.001953125, %v536_v61  ;;  %v1704_v0 = vpop.f32.mrb[7].mxu1  ;;  %v1970_v61 = vpack.c.bf16 %v761_v60, %v760_v58 }
 0x3ae   :  { %v777_v0 = vld [vmem:[%s2685_s2 + $0x158] sm:$0xff] }
 0x3af   :  { %v541_v1 = vadd.f32 1e-05, %v540_v62  ;;  %v776_v62 = vld [vmem:[%s2685_s2 + $0x150] sm:$0xff] }
 0x3b1   :  { %2065 = vrsqrt.f32 %v541_v1  ;;  %v744_v1 = vld [vmem:[%s2685_s2 + $0x50] sm:$0xff] }
 0x3b2   :  { %v1972_v5 = vpack.c.bf16 %v745_v4, %v744_v1 }
 0x3bb   :  { %v2066_v7 = vpop.eup %2065 }
 0x3bc   :  { %v543_v8 = vmul.f32 %v2066_v7, %v293_v2  ;;  %v2002_v2 = vpack.c.bf16 %v777_v0, %v776_v62  ;;  %v762_v7 = vld [vmem:[%s2685_s2 + $0xe0] sm:$0xff] }
 0x3be   :  { %1708 = vmatmul.mubr.msk.f32.vlgmr.msra.gmra.mrb[10].mxu0 %vm375_vm1, %v543_v8  ;;  %v544_v16 = vmul.f32 %v543_v8, %v2399_v15  ;;  %v754_v15 = vld [vmem:[%s2685_s2 + $0xa0] sm:$0xff]  ;;  %2003 = vmatprep.subr.bf16.mxu1 %v2002_v2  ;;  %v763_v8 = vld [vmem:[%s2685_s2 + $0xe8] sm:$0xff] }
 0x3bf   :  { %1711 = vmatpush3.msra.mxu0 %v2379_v47  ;;  %1712 = vmatprep.mubr.msk.f32.mxu0 %vm2071_vm0, %v2069_v3  ;;  %v1958_v27 = vpack.c.bf16 %v755_v23, %v754_v15  ;;  %v748_v15 = vld [vmem:[%s2685_s2 + $0x70] sm:$0xff]  ;;  %v749_v23 = vld [vmem:[%s2685_s2 + $0x78] sm:$0xff] }
 0x3c0   :  { %v545_v18 = vsub.f32 %v294_v12, %v544_v16  ;;  %1951 = vmatprep.subr.bf16.mxu0 %v1950_v9  ;;  %2005 = vmatpush3.bf16.msra.mxu1 %v2002_v2  ;;  %v1974_v9 = vpack.c.bf16 %v763_v8, %v762_v7  ;;  %v746_v12 = vld [vmem:[%s2685_s2 + $0x60] sm:$0xff] }
 0x3c1   :  { %v1976_v16 = vpack.c.bf16 %v747_v14, %v746_v12  ;;  %2007 = vmatprep.subr.bf16.mxu1 %v2006_v13 }
 0x3c2   :  { %1713 = vmatmul.mubr.msk.f32.vlgmr.msra.gmra.mrb[12].mxu0 %vm375_vm1, %v545_v18  ;;  %v765_v18 = vld [vmem:[%s2685_s2 + $0xf8] sm:$0xff] }
 0x3c3   :  { %1953 = vmatpush3.bf16.msra.mxu0 %v1952_v17  ;;  %v764_v17 = vld [vmem:[%s2685_s2 + $0xf0] sm:$0xff] }
 0x3c4   :  { %1955 = vmatprep.subr.bf16.mxu0 %v1954_v20  ;;  %v780_v20 = vld [vmem:[%s2685_s2 + $0x170] sm:$0xff]  ;;  %v1978_v21 = vpack.c.bf16 %v765_v18, %v764_v17  ;;  %2009 = vmatpush3.bf16.msra.mxu1 %v2006_v13 }
 0x3c7   :  { %1957 = vmatpush3.bf16.msra.mxu0 %v1956_v26  ;;  %v2010_v26 = vpack.c.bf16 %v781_v22, %v780_v20 }
 0x3c8   :  { %1959 = vmatprep.subr.bf16.mxu0 %v1958_v27  ;;  %v1980_v27 = vpack.c.bf16 %v749_v23, %v748_v15 }
 0x3c9   :  { %2011 = vmatprep.subr.bf16.mxu1 %v2010_v26 }
 0x3ca   :  { %2013 = vmatpush3.bf16.msra.mxu1 %v2010_v26 }
 0x3cb   :  { %1961 = vmatpush3.bf16.msra.mxu0 %v1960_v32  ;;  %1788 = vmatprep.subr.mxu1 %v2069_v3 }
 0x3cc   :  { %1963 = vmatprep.subr.bf16.mxu0 %v1962_v36 }
 0x3cf   :  { %1965 = vmatpush3.bf16.msra.mxu0 %v1964_v45 }
 0x3d0   :  { %1967 = vmatprep.subr.bf16.mxu0 %v1966_v50 }
 0x3d3   :  { %1969 = vmatpush3.bf16.msra.mxu0 %v1968_v57 }
 0x3d4   :  { %1971 = vmatprep.subr.bf16.mxu0 %v1970_v61 }
 0x3d7   :  { %1973 = vmatpush3.bf16.msra.mxu0 %v1972_v5 }
 0x3d8   :  { %1975 = vmatprep.subr.bf16.mxu0 %v1974_v9 }
 0x3db   :  { %1977 = vmatpush3.bf16.msra.mxu0 %v1976_v16 }
 0x3dc   :  { %1979 = vmatprep.subr.bf16.mxu0 %v1978_v21 }
 0x3df   :  { %1981 = vmatpush3.bf16.msra.mxu0 %v1980_v27 }
 0x3e0   :  { %2014 = vmatprep.subr.bf16.mxu0 %v2070_v25 }
 0x491   :  { %v615_v29 = vpop.f32.mrb[10].mxu0 }
 0x492   :  { %v695_v30 = vrot.slane %v615_v29, %v2420_v19  ;;  %v1709_v32 = vpop.f32.mrb[11].mxu0 }
 0x494   :  { %v696_v33 = vmul.f32 %v695_v30, %v2383_v53  ;;  %v697_v36 = vmul.f32 %v695_v30, %v2385_v59  ;;  %v698_v38 = vmul.f32 %v695_v30, %v2387_v63  ;;  %v699_v39 = vmul.f32 %v695_v30, %v2392_v6 }
 0x495   :  { %v688_v35 = vpop.f32.mrb[12].mxu0 }
 0x496   :  { %v703_v41 = vrot.slane %v688_v35, %v2420_v19  ;;  %v1714_v42 = vpop.f32.mrb[13].mxu0 }
 0x498   :  { %v704_v44 = vadd.f32 %v703_v41, %v696_v33  ;;  %v705_v45 = vadd.f32 %v703_v41, %v697_v36  ;;  %v706_v48 = vadd.f32 %v703_v41, %v698_v38  ;;  %v707_v49 = vadd.f32 %v703_v41, %v699_v39 }
 0x49a   :  { %v708_v50 = vmax.f32 %v704_v44, 0.0  ;;  %v709_v51 = vmax.f32 %v705_v45, 0.0  ;;  %v710_v52 = vmax.f32 %v706_v48, 0.0  ;;  %v711_v54 = vmax.f32 %v707_v49, 0.0 }
 0x49c   :  { %718 = vst [vmem:[#allocation3 + $0x1] sm:$0xff] %v708_v50  ;;  %719 = vst [vmem:[#allocation3 + $0x9] sm:$0xff] %v709_v51  ;;  %846 = vmatprep.mubr.f32.mxu0 %v708_v50 }
 0x49d   :  { %720 = vst [vmem:[#allocation3 + $0x19] sm:$0xff] %v710_v52  ;;  %721 = vst [vmem:[#allocation3 + $0x21] sm:$0xff] %v711_v54 }
 0x4a3   :  { %v730_v53 = vld [vmem:[#allocation3 + $0x2] sm:$0xff]  ;;  %v731_v63 = vld [vmem:[#allocation3 + $0xa] sm:$0xff] }
 0x4a4   :  { %v722_v59 = vld [vmem:[#allocation3] sm:$0xff]  ;;  %1747 = vmatprep.mubr.f32.mxu1 %v730_v53  ;;  %v723_v55 = vld [vmem:[#allocation3 + $0x8] sm:$0xff]  ;;  %v724_v57 = vld [vmem:[#allocation3 + $0x18] sm:$0xff] }
 0x4a5   :  { %847 = vmatmul.mubr.f32.vlgmr.msra.gmra.mrb[14].mxu0 %v722_v59  ;;  %1748 = vmatmul.mubr.f32.vlgmr.msra.gmra.mrb[8].mxu1 %v731_v63  ;;  %v732_v6 = vld [vmem:[#allocation3 + $0x1a] sm:$0xff]  ;;  %v733_v56 = vld [vmem:[#allocation3 + $0x22] sm:$0xff] }
 0x4a6   :  { %851 = vmatprep.mubr.f32.mxu0 %v709_v51  ;;  %1750 = vmatprep.mubr.f32.mxu1 %v732_v6  ;;  %v725_v58 = vld [vmem:[#allocation3 + $0x20] sm:$0xff]  ;;  %v952_v6 = vld [vmem:[%s2688_s7] sm:$0x1] }
 0x4a7   :  { %2016 = vmatpush3.bf16.msra.mxu0 %v2297_v24  ;;  %1789 = vmatpush3.msra.mxu1 %v2379_v47 }
 0x4a8   :  { %2017 = vmatprep.subr.bf16.mxu0 %v2070_v25  ;;  %2038 = vmatprep.subr.bf16.mxu1 %v2070_v25 }
 0x4a9   :  { %852 = vmatmul.mubr.f32.gmra.mrb[16].mxu0 %v723_v55  ;;  %1751 = vmatmul.mubr.f32.gmra.mrb[10].mxu1 %v733_v56 }
 0x4aa   :  { %856 = vmatprep.mubr.f32.mxu0 %v710_v52  ;;  %1790 = vmatprep.mubr.msk.f32.mxu1 %vm2071_vm0, %v2069_v3 }
 0x4ab   :  { %2019 = vmatpush3.bf16.msra.mxu0 %v2308_v28 }
 0x4ac   :  { %2020 = vmatprep.subr.bf16.mxu0 %v2070_v25 }
 0x4ad   :  { %857 = vmatmul.mubr.f32.gmra.mrb[18].mxu0 %v724_v57  ;;  %v953_v57 = vld [vmem:[%s2689_s8] sm:$0x1] }
 0x4ae   :  { %861 = vmatprep.mubr.f32.mxu0 %v711_v54 }
 0x4af   :  { %2022 = vmatpush3.bf16.msra.mxu0 %v2318_v31 }
 0x4b0   :  { %2023 = vmatprep.subr.bf16.mxu0 %v2070_v25 }
 0x4b1   :  { %862 = vmatmul.mubr.f32.gmra.mrb[20].mxu0 %v725_v58 }
 0x4b2   :  { %1785 = vmatprep.mubr.msk.f32.mxu0 %vm2071_vm0, %v2069_v3 }
 0x4b3   :  { %2025 = vmatpush3.bf16.msra.mxu0 %v2328_v34 }
 0x4b4   :  { %2026 = vmatprep.subr.bf16.mxu0 %v2070_v25 }
 0x4b7   :  { %2028 = vmatpush3.bf16.msra.mxu0 %v2338_v37 }
 0x4b8   :  { %2029 = vmatprep.subr.bf16.mxu0 %v2070_v25 }
 0x4bb   :  { %2031 = vmatpush3.bf16.msra.mxu0 %v2348_v40 }
 0x4bc   :  { %2032 = vmatprep.subr.bf16.mxu0 %v2070_v25 }
 0x4bf   :  { %2034 = vmatpush3.bf16.msra.mxu0 %v2358_v43 }
 0x4c0   :  { %2035 = vmatprep.subr.bf16.mxu0 %v2070_v25 }
 0x4c3   :  { %2037 = vmatpush3.bf16.msra.mxu0 %v2368_v46 }
 0x4c4   :  { %1828 = vmatprep.subr.mxu0 %v2069_v3 }
 0x578   :  { %v1520_v60 = vpop.f32.mrb[14].mxu0  ;;  %v1749_v61 = vpop.f32.mrb[8].mxu1 }
 0x579   :  { %v1521_v62 = vpop.f32.mrb[15].mxu0  ;;  %v933_v1 = vpop.f32.mrb[9].mxu1 }
 0x57a   :  { %v1522_v0 = vadd.f32 %v1521_v62, %v1520_v60 }
 0x57c   :  { %v2613_v2 = vadd.f32 %v1522_v0, %v933_v1  ;;  %v1523_v4 = vpop.f32.mrb[16].mxu0  ;;  %v1752_v5 = vpop.f32.mrb[10].mxu1 }
 0x57d   :  { %v1524_v7 = vpop.f32.mrb[17].mxu0  ;;  %v943_v9 = vpop.f32.mrb[11].mxu1 }
 0x57e   :  { %v1525_v8 = vadd.f32 %v1524_v7, %v1523_v4 }
 0x580   :  { %v2615_v10 = vadd.f32 %v1749_v61, %v1525_v8  ;;  %v1526_v11 = vpop.f32.mrb[18].mxu0 }
 0x581   :  { %v1527_v12 = vpop.f32.mrb[19].mxu0 }
 0x582   :  { %v1528_v13 = vadd.f32 %v1527_v12, %v1526_v11  ;;  %v954_v18 = vadd.f32 %v2615_v10, %v2613_v2 }
 0x584   :  { %v2617_v14 = vadd.f32 %v1528_v13, %v943_v9  ;;  %v1529_v16 = vpop.f32.mrb[20].mxu0 }
 0x585   :  { %v1530_v17 = vpop.f32.mrb[21].mxu0 }
 0x586   :  { %v1531_v20 = vadd.f32 %v1530_v17, %v1529_v16  ;;  %v955_v21 = vadd.f32 %v954_v18, %v2617_v14 }
 0x588   :  { %v2622_v22 = vadd.f32 %v1752_v5, %v1531_v20 }
 0x58a   :  { %v956_v15 = vadd.f32 %v955_v21, %v2622_v22 }
 0x58c   :  { %v957_v23 = vrot.slane %v956_v15, 4 }
 0x58e   :  { %v958_v26 = vadd.f32 %v957_v23, %v956_v15 }
 0x590   :  { %v959_v27 = vrot.slane %v958_v26, 2 }
 0x592   :  { %v960_v29 = vadd.f32 %v959_v27, %v958_v26 }
 0x594   :  { %v961_v30 = vrot.slane %v960_v29, 1 }
 0x596   :  { %v962_v32 = vadd.f32 %v961_v30, %v960_v29 }
 0x598   :  { %1786 = vmatmul.mubr.f32.vlgmr.msra.gmra.mrb[22].mxu0 %v962_v32 }
 0x599   :  { %1829 = vmatpush3.msra.mxu0 %v2379_v47  ;;  %1830 = vmatprep.mubr.msk.f32.mxu0 %vm2071_vm0, %v2069_v3 }
 0x59a   :  { %1833 = vmatprep.subr.mxu0 %v2069_v3 }
 0x66b   :  { %v1029_v33 = vpop.f32.mrb[22].mxu0 }
 0x66c   :  { %v1033_v35 = vmul.f32 0.001953125, %v1029_v33  ;;  %v1787_v36 = vpop.f32.mrb[23].mxu0 }
 0x66e   :  { %1791 = vmatmul.mubr.msk.f32.vlgmr.msra.gmra.mrb[12].mxu1 %vm375_vm1, %v1033_v35 }
 0x66f   :  { %2040 = vmatpush3.bf16.msra.mxu1 %v2297_v24  ;;  %1825 = vmatprep.mubr.msk.f32.mxu1 %vm2071_vm0, %v2069_v3 }
 0x670   :  { %2041 = vmatprep.subr.bf16.mxu1 %v2070_v25 }
 0x673   :  { %2043 = vmatpush3.bf16.msra.mxu1 %v2308_v28 }
 0x674   :  { %2044 = vmatprep.subr.bf16.mxu1 %v2070_v25 }
 0x677   :  { %2046 = vmatpush3.bf16.msra.mxu1 %v2318_v31 }
 0x678   :  { %2047 = vmatprep.subr.bf16.mxu1 %v2070_v25 }
 0x67b   :  { %2049 = vmatpush3.bf16.msra.mxu1 %v2328_v34 }
 0x67c   :  { %2050 = vmatprep.subr.bf16.mxu1 %v2070_v25 }
 0x67f   :  { %2052 = vmatpush3.bf16.msra.mxu1 %v2338_v37 }
 0x680   :  { %2053 = vmatprep.subr.bf16.mxu1 %v2070_v25 }
 0x683   :  { %2055 = vmatpush3.bf16.msra.mxu1 %v2348_v40 }
 0x684   :  { %2056 = vmatprep.subr.bf16.mxu1 %v2070_v25 }
 0x687   :  { %2058 = vmatpush3.bf16.msra.mxu1 %v2358_v43 }
 0x688   :  { %2059 = vmatprep.subr.bf16.mxu1 %v2070_v25 }
 0x68b   :  { %2061 = vmatpush3.bf16.msra.mxu1 %v2368_v46 }
 0x741   :  { %v1103_v24 = vpop.f32.mrb[12].mxu1 }
 0x742   :  { %v1110_v28 = vrot.slane %v1103_v24, %v2420_v19  ;;  %v1792_v31 = vpop.f32.mrb[13].mxu1 }
 0x744   :  { %v1111_v34 = vsub.f32 %v2613_v2, %v1110_v28  ;;  %v1112_v37 = vsub.f32 %v2615_v10, %v1110_v28  ;;  %v1113_v38 = vsub.f32 %v2617_v14, %v1110_v28  ;;  %v1114_v40 = vsub.f32 %v2622_v22, %v1110_v28 }
 0x746   :  { %v1115_v39 = vmul.f32 %v1111_v34, %v1111_v34  ;;  %v1116_v41 = vmul.f32 %v1112_v37, %v1112_v37  ;;  %v1117_v42 = vmul.f32 %v1113_v38, %v1113_v38  ;;  %v1118_v44 = vmul.f32 %v1114_v40, %v1114_v40 }
 0x748   :  { %v1119_v43 = vadd.f32 %v1116_v41, %v1115_v39 }
 0x74a   :  { %v1120_v25 = vadd.f32 %v1119_v43, %v1117_v42 }
 0x74c   :  { %v1121_v45 = vadd.f32 %v1120_v25, %v1118_v44 }
 0x74e   :  { %v1122_v46 = vrot.slane %v1121_v45, 4 }
 0x750   :  { %v1123_v48 = vadd.f32 %v1122_v46, %v1121_v45 }
 0x752   :  { %v1124_v49 = vrot.slane %v1123_v48, 2 }
 0x754   :  { %v1125_v50 = vadd.f32 %v1124_v49, %v1123_v48 }
 0x756   :  { %v1126_v51 = vrot.slane %v1125_v50, 1 }
 0x758   :  { %v1127_v52 = vadd.f32 %v1126_v51, %v1125_v50 }
 0x75a   :  { %1826 = vmatmul.mubr.f32.vlgmr.msra.gmra.mrb[14].mxu1 %v1127_v52 }
 0x82d   :  { %v1194_v54 = vpop.f32.mrb[14].mxu1 }
 0x82e   :  { %v1198_v53 = vmul.f32 0.001953125, %v1194_v54  ;;  %v1827_v59 = vpop.f32.mrb[15].mxu1 }
 0x830   :  { %v1199_v63 = vadd.f32 1e-05, %v1198_v53 }
 0x832   :  { %2067 = vrsqrt.f32 %v1199_v63 }
 0x83c   :  { %v2068_v55 = vpop.eup %2067 }
 0x83d   :  { %v1201_v56 = vmul.f32 %v2068_v55, %v952_v6 }
 0x83f   :  { %1831 = vmatmul.mubr.msk.f32.vlgmr.msra.gmra.mrb[24].mxu0 %vm375_vm1, %v1201_v56  ;;  %v1202_v58 = vmul.f32 %v1201_v56, %v1033_v35 }
 0x840   :  { %1834 = vmatpush3.msra.mxu0 %v2379_v47  ;;  %1835 = vmatprep.mubr.msk.f32.mxu0 %vm2071_vm0, %v2069_v3 }
 0x841   :  { %v1203_v60 = vsub.f32 %v953_v57, %v1202_v58 }
 0x843   :  { %1836 = vmatmul.mubr.msk.f32.vlgmr.msra.gmra.mrb[26].mxu0 %vm375_vm1, %v1203_v60 }
 0x912   :  { %v1273_v61 = vpop.f32.mrb[24].mxu0 }
 0x913   :  { %v1353_v62 = vrot.slane %v1273_v61, %v2420_v19  ;;  %v1832_v0 = vpop.f32.mrb[25].mxu0 }
 0x915   :  { %v1354_v1 = vmul.f32 %v1353_v62, %v2613_v2  ;;  %v1355_v5 = vmul.f32 %v1353_v62, %v2615_v10  ;;  %v1356_v7 = vmul.f32 %v1353_v62, %v2617_v14  ;;  %v1357_v8 = vmul.f32 %v1353_v62, %v2622_v22 }
 0x916   :  { %v1346_v4 = vpop.f32.mrb[26].mxu0 }
 0x917   :  { %v1361_v47 = vrot.slane %v1346_v4, %v2420_v19  ;;  %v1837_v9 = vpop.f32.mrb[27].mxu0 }
 0x919   :  { %v1362_v3 = vadd.f32 %v1361_v47, %v1354_v1  ;;  %v1363_v11 = vadd.f32 %v1361_v47, %v1355_v5  ;;  %v1364_v12 = vadd.f32 %v1361_v47, %v1356_v7  ;;  %v1365_v13 = vadd.f32 %v1361_v47, %v1357_v8 }
 0x91b   :  { %v1366_v16 = vmax.f32 %v1362_v3, 0.0  ;;  %v1367_v17 = vmax.f32 %v1363_v11, 0.0  ;;  %v1368_v18 = vmax.f32 %v1364_v12, 0.0  ;;  %v1369_v20 = vmax.f32 %v1365_v13, 0.0 }
 0x91d   :  { %1370 = vst [vmem:[%s2690_s9] sm:$0xff] %v1366_v16  ;;  %1371 = vst [vmem:[%s2690_s9 + $0x8] sm:$0xff] %v1367_v17 }
 0x91e   :  { %1372 = vst [vmem:[%s2690_s9 + $0x10] sm:$0xff] %v1368_v18  ;;  %1373 = vst [vmem:[%s2690_s9 + $0x18] sm:$0xff] %v1369_v20 }

</bundles_post_ra>
